<compile_context>
chip_gen: v7x
topology: tpu7x:2x2x1
jax: 0.10.0
libtpu: 0.0.40
codegen_flags: <defaults>
</compile_context>

<pallas_src>
import functools

import jax
import jax.numpy as jnp
from jax.experimental import pallas as pl
from jax.experimental.pallas import tpu as pltpu


# ---------------------------------------------------------------------------
# Kernel bodies
# ---------------------------------------------------------------------------

def _gru_cell(x, h, wih_ref, whh_ref, b_fused_ref, b_hn_ref, h_dim):
    """GRU cell math on one (TB, ·) batch tile.

    Gates are lane-concatenated as [r | z | n]; r/z biases are pre-summed,
    b_hn stays separate because it must sit inside the r * (...) term.
    h is the float32 carry; activations are cast to the weight dtype (bf16)
    for the MXU, accumulation stays in float32.
    """
    H = h_dim
    wdt = wih_ref.dtype

    # Two fused MXU matmuls covering all three gates.  (They cannot be fused
    # into a single [x|h] @ W dot: the n gate needs gi_n and gh_n separately.)
    gi = jnp.dot(x.astype(wdt), wih_ref[...], preferred_element_type=jnp.float32)
    gi = gi + b_fused_ref[...]
    gh = jnp.dot(h.astype(wdt), whh_ref[...], preferred_element_type=jnp.float32)

    rz = jax.nn.sigmoid(gi[:, : 2 * H] + gh[:, : 2 * H])
    r = rz[:, :H]
    z = rz[:, H:]
    n = jnp.tanh(gi[:, 2 * H:] + r * (gh[:, 2 * H:] + b_hn_ref[...]))
    return (1.0 - z) * n + z * h


def _gru_step_kernel(x_ref, h_ref, wih_ref, whh_ref, b_fused_ref, b_hn_ref,
                     out_ref, *, h_dim):
    """Single GRU step on one batch tile (matches RSSM.forward)."""
    h = h_ref[...].astype(jnp.float32)
    h_next = _gru_cell(x_ref[...], h, wih_ref, whh_ref, b_fused_ref, b_hn_ref, h_dim)
    out_ref[...] = h_next.astype(out_ref.dtype)


def _gru_rollout_kernel(xs_ref, h0_ref, wih_ref, whh_ref, b_fused_ref, b_hn_ref,
                        out_ref, h_carry_ref, *, h_dim):
    """T GRU steps with h carried in VMEM scratch; grid = (batch, T)."""
    t = pl.program_id(1)

    @pl.when(t == 0)
    def _():
        h_carry_ref[...] = h0_ref[...].astype(jnp.float32)

    h = h_carry_ref[...]
    h_next = _gru_cell(xs_ref[0], h, wih_ref, whh_ref, b_fused_ref, b_hn_ref, h_dim)
    h_carry_ref[...] = h_next
    out_ref[0] = h_next.astype(out_ref.dtype)


# ---------------------------------------------------------------------------
# Parameter packing (one-time, outside the hot path)
# ---------------------------------------------------------------------------

def prepare_gru_params(w_ih, w_hh, b_ih, b_hh, *, weight_dtype=jnp.bfloat16):
    """Pack PyTorch GRU params for the kernels.

    w_ih: (3H, D_in), w_hh: (3H, H), b_ih/b_hh: (3H,) in gate order [r, z, n].
    Returns:
      wih_t   (D_in, 3H)  transposed, gates lane-concatenated, weight_dtype
      whh_t   (H,    3H)  transposed, weight_dtype
      b_fused (1,    3H)  f32 [b_ir+b_hr | b_iz+b_hz | b_in]
      b_hn    (1,    H)   f32 hidden bias of the n gate (inside r * (...))
    """
    three_h = w_ih.shape[0]
    H = three_h // 3
    wih_t = jnp.asarray(w_ih, jnp.float32).T.astype(weight_dtype)
    whh_t = jnp.asarray(w_hh, jnp.float32).T.astype(weight_dtype)
    b_i = jnp.asarray(b_ih, jnp.float32).reshape(1, 3 * H)
    b_h = jnp.asarray(b_hh, jnp.float32).reshape(1, 3 * H)
    b_fused = jnp.concatenate(
        [b_i[:, : 2 * H] + b_h[:, : 2 * H], b_i[:, 2 * H:]], axis=1)
    b_hn = b_h[:, 2 * H:]
    return wih_t, whh_t, b_fused, b_hn


# ---------------------------------------------------------------------------
# Spec / VMEM helpers
# ---------------------------------------------------------------------------

def _weight_specs(resident, d_in, h_dim):
    if resident:
        # Whole-array VMEM residency: one HBM->VMEM copy per launch, reused by
        # every grid step, no double buffering.
        vmem = pltpu.MemorySpace.VMEM
        return [pl.BlockSpec(memory_space=vmem) for _ in range(4)]
    # Fallback: whole-matrix blocks with constant index maps (double-buffered).
    shapes = [(d_in, 3 * h_dim), (h_dim, 3 * h_dim), (1, 3 * h_dim), (1, h_dim)]
    return [pl.BlockSpec(s, lambda *_: (0, 0)) for s in shapes]


def _vmem_limit_bytes(batch_block, d_in, h_dim, weight_itemsize, resident):
    weight_bytes = 3 * h_dim * (d_in + h_dim) * weight_itemsize + 4 * 4 * h_dim
    if not resident:
        weight_bytes *= 2                       # double-buffered fallback
    act_bytes = 2 * batch_block * (d_in + 2 * h_dim) * 4   # x/h/out tiles (2 bufs)
    interm_bytes = 6 * batch_block * 3 * h_dim * 4          # gi/gh/gate temporaries
    total = weight_bytes + act_bytes + interm_bytes + (4 << 20)
    return int(min(100 << 20, max(total, 32 << 20)))


def _batch_block(B, batch_block):
    if batch_block is None:
        batch_block = B if B <= 512 else 512
    if batch_block != B:
        assert B % batch_block == 0 and batch_block % 8 == 0, (
            "batch_block must divide B and be a multiple of 8 (or equal B)")
    return batch_block


# ---------------------------------------------------------------------------
# Wrappers
# ---------------------------------------------------------------------------

def rssm_forward(x, h, wih_t, whh_t, b_fused, b_hn, *, batch_block=None,
                 weights_resident=True, alias_h_to_out=True):
    """One GRU step on pre-packed params (== RSSM.forward).

    x: (B, D_in), h: (B, H) -> h_next: (B, H)
    """
    B, d_in = x.shape
    H = h.shape[1]
    batch_block = _batch_block(B, batch_block)
    grid = (B // batch_block,)
    kernel = functools.partial(_gru_step_kernel, h_dim=H)

    flops = 2 * B * 3 * H * (d_in + H)
    transcendentals = 3 * B * H
    bytes_accessed = (wih_t.dtype.itemsize * 3 * H * (d_in + H)
                      + 4 * (B * d_in + 2 * B * H + 4 * H))

    alias = {1: 0} if (alias_h_to_out and h.dtype == x.dtype) else {}

    def build(resident):
        return pl.pallas_call(
            kernel,
            out_shape=jax.ShapeDtypeStruct((B, H), x.dtype),
            grid_spec=pltpu.PrefetchScalarGridSpec(
                num_scalar_prefetch=0,
                grid=grid,
                in_specs=[
                    pl.BlockSpec((batch_block, d_in), lambda b: (b, 0)),   # x tile
                    pl.BlockSpec((batch_block, H), lambda b: (b, 0)),      # h tile
                    *_weight_specs(resident, d_in, H),                     # weights/biases
                ],
                out_specs=pl.BlockSpec((batch_block, H), lambda b: (b, 0)),
            ),
            compiler_params=pltpu.CompilerParams(
                dimension_semantics=("parallel",),
                vmem_limit_bytes=_vmem_limit_bytes(
                    batch_block, d_in, H, wih_t.dtype.itemsize, resident),
            ),
            cost_estimate=pl.CostEstimate(
                flops=flops, transcendentals=transcendentals,
                bytes_accessed=bytes_accessed),
            input_output_aliases=alias,
        )

    args = (x, h, wih_t, whh_t, b_fused, b_hn)
    if weights_resident:
        try:
            return build(True)(*args)
        except Exception:   # fall back to the known-good blocked weight layout
            return build(False)(*args)
    return build(False)(*args)


def rssm_rollout(xs, h0, wih_t, whh_t, b_fused, b_hn, *, batch_block=None,
                 weights_resident=True):
    """T GRU steps with the time loop inside the kernel.

    xs: (T, B, D_in), h0: (B, H) -> hs: (T, B, H), hs[t] = hidden state after step t.
    Weights are loaded into VMEM once per launch; h is carried in VMEM scratch
    across the T ("arbitrary") grid axis.
    """
    T, B, d_in = xs.shape
    H = h0.shape[1]
    batch_block = _batch_block(B, batch_block)
    grid = (B // batch_block, T)            # batch outer (parallel), T inner (arbitrary)
    kernel = functools.partial(_gru_rollout_kernel, h_dim=H)

    flops = 2 * T * B * 3 * H * (d_in + H)
    transcendentals = 3 * T * B * H
    bytes_accessed = (wih_t.dtype.itemsize * 3 * H * (d_in + H)
                      + 4 * (T * B * d_in + B * H + T * B * H + 4 * H))

    def build(resident):
        return pl.pallas_call(
            kernel,
            out_shape=jax.ShapeDtypeStruct((T, B, H), xs.dtype),
            grid_spec=pltpu.PrefetchScalarGridSpec(
                num_scalar_prefetch=0,
                grid=grid,
                in_specs=[
                    pl.BlockSpec((1, batch_block, d_in), lambda b, t: (t, b, 0)),  # x_t tile
                    pl.BlockSpec((batch_block, H), lambda b, t: (b, 0)),           # h0 tile
                    *_weight_specs(resident, d_in, H),                             # weights/biases
                ],
                out_specs=pl.BlockSpec((1, batch_block, H), lambda b, t: (t, b, 0)),
                scratch_shapes=[pltpu.VMEM((batch_block, H), jnp.float32)],        # h carry
            ),
            compiler_params=pltpu.CompilerParams(
                dimension_semantics=("parallel", "arbitrary"),
                vmem_limit_bytes=_vmem_limit_bytes(
                    batch_block, d_in, H, wih_t.dtype.itemsize, resident),
            ),
            cost_estimate=pl.CostEstimate(
                flops=flops, transcendentals=transcendentals,
                bytes_accessed=bytes_accessed),
        )

    args = (xs, h0, wih_t, whh_t, b_fused, b_hn)
    if weights_resident:
        try:
            return build(True)(*args)
        except Exception:   # fall back to the known-good blocked weight layout
            return build(False)(*args)
    return build(False)(*args)


# ---------------------------------------------------------------------------
# Pure-JAX reference (torch.nn.GRU single-step semantics)
# ---------------------------------------------------------------------------

def rssm_reference(x, h, w_ih, w_hh, b_ih, b_hh):
    H = h.shape[1]
    gi = x @ w_ih.T + b_ih
    gh = h @ w_hh.T + b_hh
    i_r, i_z, i_n = gi[:, :H], gi[:, H:2 * H], gi[:, 2 * H:]
    h_r, h_z, h_n = gh[:, :H], gh[:, H:2 * H], gh[:, 2 * H:]
    r = jax.nn.sigmoid(i_r + h_r)
    z = jax.nn.sigmoid(i_z + h_z)
    n = jnp.tanh(i_n + r * h_n)
    return (1.0 - z) * n + z * h


if __name__ == "__main__":
    B, D_IN, H, T = 16, 16, 32, 6            # small demo shapes

    key = jax.random.PRNGKey(0)
    kx, kh, kxs, k1, k2, k3, k4 = jax.random.split(key, 7)

    x = jax.random.normal(kx, (B, D_IN), dtype=jnp.float32)
    h = jax.random.normal(kh, (B, H), dtype=jnp.float32)
    xs = jax.random.normal(kxs, (T, B, D_IN), dtype=jnp.float32)

    # PyTorch-style GRU init: uniform(-1/sqrt(H), 1/sqrt(H)).
    bound = 1.0 / jnp.sqrt(jnp.float32(H))
    w_ih = jax.random.uniform(k1, (3 * H, D_IN), jnp.float32, -bound, bound)
    w_hh = jax.random.uniform(k2, (3 * H, H), jnp.float32, -bound, bound)
    b_ih = jax.random.uniform(k3, (3 * H,), jnp.float32, -bound, bound)
    b_hh = jax.random.uniform(k4, (3 * H,), jnp.float32, -bound, bound)

    # One-time packing (bf16 weights, f32 biases) — outside the rollout hot path.
    params = prepare_gru_params(w_ih, w_hh, b_ih, b_hh, weight_dtype=jnp.bfloat16)
    jax.block_until_ready(params)

    # References first (h may be aliased/donated by the forward call below).
    h_ref = rssm_reference(x, h, w_ih, w_hh, b_ih, b_hh)
    hs_ref = []
    h_t = h
    for t in range(T):
        h_t = rssm_reference(xs[t], h_t, w_ih, w_hh, b_ih, b_hh)
        hs_ref.append(h_t)
    hs_ref = jnp.stack(hs_ref)

    # In-kernel rollout: weights VMEM-resident across all T steps.
    hs = rssm_rollout(xs, h, *params, batch_block=8)
    jax.block_until_ready(hs)

    # Single step (== RSSM.forward).
    h_next = rssm_forward(x, h, *params, batch_block=8)
    jax.block_until_ready(h_next)

    assert h_next.shape == (B, H)
    assert hs.shape == (T, B, H)
    # bf16 weights -> loosened tolerance vs the f32 reference.
    assert jnp.allclose(h_next, h_ref, atol=2e-2, rtol=0), "single-step mismatch vs reference GRU"
    assert jnp.allclose(hs, hs_ref, atol=3e-2, rtol=0), "rollout mismatch vs reference GRU"

    print("KERNEL_OK")
</pallas_src>

<mosaic_0001>
module attributes {stable_mosaic.version = 11 : i64} {
  func.func @_gru_rollout_kernel(%arg0: i32, %arg1: i32, %arg2: memref<1x8x16xf32, #tpu.memory_space<vmem>>, %arg3: memref<8x32xf32, #tpu.memory_space<vmem>>, %arg4: memref<16x96xbf16, #tpu.memory_space<vmem>>, %arg5: memref<32x96xbf16, #tpu.memory_space<vmem>>, %arg6: memref<1x96xf32, #tpu.memory_space<vmem>>, %arg7: memref<1x32xf32, #tpu.memory_space<vmem>>, %arg8: memref<1x8x32xf32, #tpu.memory_space<vmem>>, %arg9: memref<8x32xf32, #tpu.memory_space<vmem>>) attributes {dimension_semantics = [#tpu.dimension_semantics<parallel>, #tpu.dimension_semantics<arbitrary>], iteration_bounds = array<i64: 2, 6>, scalar_prefetch = 0 : i64, scratch_operands = 1 : i64, tpu.core_type = #tpu.core_type<tc>, window_params = [{transform_indices = @transform_0, window_bounds = array<i64: 1, 8, 16>}, {transform_indices = @transform_1, window_bounds = array<i64: 8, 32>}, {pipeline_mode = #tpu.pipeline_mode<synchronous>, transform_indices = @transform_2, window_bounds = array<i64: 16, 96>}, {pipeline_mode = #tpu.pipeline_mode<synchronous>, transform_indices = @transform_3, window_bounds = array<i64: 32, 96>}, {pipeline_mode = #tpu.pipeline_mode<synchronous>, transform_indices = @transform_4, window_bounds = array<i64: 1, 96>}, {pipeline_mode = #tpu.pipeline_mode<synchronous>, transform_indices = @transform_5, window_bounds = array<i64: 1, 32>}, {transform_indices = @transform_6, window_bounds = array<i64: 1, 8, 32>}]} {
    %c0_i32 = arith.constant 0 : i32
    %0 = arith.cmpi eq, %arg1, %c0_i32 : i32
    %1 = arith.extui %0 : i1 to i32
    %c0_i32_0 = arith.constant 0 : i32
    %2 = arith.cmpi ne, %1, %c0_i32_0 : i32
    scf.if %2 {
      %c0_21 = arith.constant 0 : index
      %c0_22 = arith.constant 0 : index
      %42 = vector.load %arg3[%c0_21, %c0_22] : memref<8x32xf32, #tpu.memory_space<vmem>>, vector<8x32xf32>
      %c0_23 = arith.constant 0 : index
      %c0_24 = arith.constant 0 : index
      %43 = vector.load %arg9[%c0_23, %c0_24] : memref<8x32xf32, #tpu.memory_space<vmem>>, vector<8x32xf32>
      tpu.vector_store %arg9[%c0_23, %c0_24], %42 {strides = array<i32>} : memref<8x32xf32, #tpu.memory_space<vmem>>, vector<8x32xf32>,
    } else {
    }
    %c0 = arith.constant 0 : index
    %c0_1 = arith.constant 0 : index
    %3 = vector.load %arg9[%c0, %c0_1] : memref<8x32xf32, #tpu.memory_space<vmem>>, vector<8x32xf32>
    %c0_2 = arith.constant 0 : index
    %c0_3 = arith.constant 0 : index
    %c0_4 = arith.constant 0 : index
    %4 = vector.load %arg2[%c0_2, %c0_3, %c0_4] : memref<1x8x16xf32, #tpu.memory_space<vmem>>, vector<1x8x16xf32>
    %5 = vector.shape_cast %4 : vector<1x8x16xf32> to vector<8x16xf32>
    %6 = arith.truncf %5 : vector<8x16xf32> to vector<8x16xbf16>
    %c0_5 = arith.constant 0 : index
    %c0_6 = arith.constant 0 : index
    %7 = vector.load %arg4[%c0_5, %c0_6] : memref<16x96xbf16, #tpu.memory_space<vmem>>, vector<16x96xbf16>
    %cst = arith.constant dense<0.000000e+00> : vector<8x96xf32>
    %8 = tpu.matmul %6, %7, %cst {dimension_numbers = #tpu.dot_dimension_numbers<[1], [0], [0], [1], [0, 0, 1, 1], [], []>} : vector<8x16xbf16>, vector<16x96xbf16>, vector<8x96xf32> -> vector<8x96xf32>
    %c0_7 = arith.constant 0 : index
    %c0_8 = arith.constant 0 : index
    %9 = vector.load %arg6[%c0_7, %c0_8] : memref<1x96xf32, #tpu.memory_space<vmem>>, vector<1x96xf32>
    %10 = vector.broadcast %9 : vector<1x96xf32> to vector<8x96xf32>
    %11 = arith.addf %8, %10 : vector<8x96xf32>
    %12 = arith.truncf %3 : vector<8x32xf32> to vector<8x32xbf16>
    %c0_9 = arith.constant 0 : index
    %c0_10 = arith.constant 0 : index
    %13 = vector.load %arg5[%c0_9, %c0_10] : memref<32x96xbf16, #tpu.memory_space<vmem>>, vector<32x96xbf16>
    %cst_11 = arith.constant dense<0.000000e+00> : vector<8x96xf32>
    %14 = tpu.matmul %12, %13, %cst_11 {dimension_numbers = #tpu.dot_dimension_numbers<[1], [0], [0], [1], [0, 0, 1, 1], [], []>} : vector<8x32xbf16>, vector<32x96xbf16>, vector<8x96xf32> -> vector<8x96xf32>
    %15 = vector.extract_strided_slice %11 {offsets = [0, 0], sizes = [8, 64], strides = [1, 1]} : vector<8x96xf32> to vector<8x64xf32>
    %16 = vector.extract_strided_slice %14 {offsets = [0, 0], sizes = [8, 64], strides = [1, 1]} : vector<8x96xf32> to vector<8x64xf32>
    %17 = arith.addf %15, %16 : vector<8x64xf32>
    %18 = arith.negf %17 : vector<8x64xf32>
    %19 = math.exp %18 : vector<8x64xf32>
    %cst_12 = arith.constant 1.000000e+00 : f32
    %20 = vector.broadcast %cst_12 : f32 to vector<8x64xf32>
    %21 = arith.addf %20, %19 : vector<8x64xf32>
    %22 = arith.divf %20, %21 : vector<8x64xf32>
    %23 = vector.extract_strided_slice %22 {offsets = [0, 0], sizes = [8, 32], strides = [1, 1]} : vector<8x64xf32> to vector<8x32xf32>
    %24 = vector.extract_strided_slice %22 {offsets = [0, 32], sizes = [8, 32], strides = [1, 1]} : vector<8x64xf32> to vector<8x32xf32>
    %25 = vector.extract_strided_slice %11 {offsets = [0, 64], sizes = [8, 32], strides = [1, 1]} : vector<8x96xf32> to vector<8x32xf32>
    %26 = vector.extract_strided_slice %14 {offsets = [0, 64], sizes = [8, 32], strides = [1, 1]} : vector<8x96xf32> to vector<8x32xf32>
    %c0_13 = arith.constant 0 : index
    %c0_14 = arith.constant 0 : index
    %27 = vector.load %arg7[%c0_13, %c0_14] : memref<1x32xf32, #tpu.memory_space<vmem>>, vector<1x32xf32>
    %28 = vector.broadcast %27 : vector<1x32xf32> to vector<8x32xf32>
    %29 = arith.addf %26, %28 : vector<8x32xf32>
    %30 = arith.mulf %23, %29 : vector<8x32xf32>
    %31 = arith.addf %25, %30 : vector<8x32xf32>
    %32 = math.tanh %31 : vector<8x32xf32>
    %cst_15 = arith.constant 1.000000e+00 : f32
    %33 = vector.broadcast %cst_15 : f32 to vector<8x32xf32>
    %34 = arith.subf %33, %24 : vector<8x32xf32>
    %35 = arith.mulf %34, %32 : vector<8x32xf32>
    %36 = arith.mulf %24, %3 : vector<8x32xf32>
    %37 = arith.addf %35, %36 : vector<8x32xf32>
    %c0_16 = arith.constant 0 : index
    %c0_17 = arith.constant 0 : index
    %38 = vector.load %arg9[%c0_16, %c0_17] : memref<8x32xf32, #tpu.memory_space<vmem>>, vector<8x32xf32>
    tpu.vector_store %arg9[%c0_16, %c0_17], %37 {strides = array<i32>} : memref<8x32xf32, #tpu.memory_space<vmem>>, vector<8x32xf32>,
    %c0_18 = arith.constant 0 : index
    %c0_19 = arith.constant 0 : index
    %c0_20 = arith.constant 0 : index
    %39 = vector.load %arg8[%c0_18, %c0_19, %c0_20] : memref<1x8x32xf32, #tpu.memory_space<vmem>>, vector<1x8x32xf32>
    %40 = vector.shape_cast %39 : vector<1x8x32xf32> to vector<8x32xf32>
    %41 = vector.shape_cast %37 : vector<8x32xf32> to vector<1x8x32xf32>
    tpu.vector_store %arg8[%c0_18, %c0_19, %c0_20], %41 {strides = array<i32>} : memref<1x8x32xf32, #tpu.memory_space<vmem>>, vector<1x8x32xf32>,
    return
  }
  func.func @transform_0(%arg0: i32, %arg1: i32) -> (i32, i32, i32) {
    %c0_i32 = arith.constant 0 : i32
    %c0_i32_0 = arith.constant 0 : i32
    return %arg1, %arg0, %c0_i32 : i32, i32, i32
  }
  func.func @transform_1(%arg0: i32, %arg1: i32) -> (i32, i32) {
    %c0_i32 = arith.constant 0 : i32
    %c0_i32_0 = arith.constant 0 : i32
    return %arg0, %c0_i32 : i32, i32
  }
  func.func @transform_2(%arg0: i32, %arg1: i32) -> (i32, i32) {
    %c0_i32 = arith.constant 0 : i32
    %c0_i32_0 = arith.constant 0 : i32
    %c0_i32_1 = arith.constant 0 : i32
    return %c0_i32, %c0_i32_0 : i32, i32
  }
  func.func @transform_3(%arg0: i32, %arg1: i32) -> (i32, i32) {
    %c0_i32 = arith.constant 0 : i32
    %c0_i32_0 = arith.constant 0 : i32
    %c0_i32_1 = arith.constant 0 : i32
    return %c0_i32, %c0_i32_0 : i32, i32
  }
  func.func @transform_4(%arg0: i32, %arg1: i32) -> (i32, i32) {
    %c0_i32 = arith.constant 0 : i32
    %c0_i32_0 = arith.constant 0 : i32
    %c0_i32_1 = arith.constant 0 : i32
    return %c0_i32, %c0_i32_0 : i32, i32
  }
  func.func @transform_5(%arg0: i32, %arg1: i32) -> (i32, i32) {
    %c0_i32 = arith.constant 0 : i32
    %c0_i32_0 = arith.constant 0 : i32
    %c0_i32_1 = arith.constant 0 : i32
    return %c0_i32, %c0_i32_0 : i32, i32
  }
  func.func @transform_6(%arg0: i32, %arg1: i32) -> (i32, i32, i32) {
    %c0_i32 = arith.constant 0 : i32
    %c0_i32_0 = arith.constant 0 : i32
    return %arg1, %arg0, %c0_i32 : i32, i32, i32
  }
}

module attributes {stable_mosaic.version = 11 : i64} {
  func.func @_gru_rollout_kernel(%arg0: i32, %arg1: i32, %arg2: memref<1x8x16xf32, #tpu.memory_space<vmem>>, %arg3: memref<8x32xf32, #tpu.memory_space<vmem>>, %arg4: memref<16x96xbf16, #tpu.memory_space<vmem>>, %arg5: memref<32x96xbf16, #tpu.memory_space<vmem>>, %arg6: memref<1x96xf32, #tpu.memory_space<vmem>>, %arg7: memref<1x32xf32, #tpu.memory_space<vmem>>, %arg8: memref<1x8x32xf32, #tpu.memory_space<vmem>>, %arg9: memref<8x32xf32, #tpu.memory_space<vmem>>) attributes {dimension_semantics = [#tpu.dimension_semantics<parallel>, #tpu.dimension_semantics<arbitrary>], iteration_bounds = array<i64: 2, 6>, scalar_prefetch = 0 : i64, scratch_operands = 1 : i64, tpu.core_type = #tpu.core_type<tc>, window_params = [{transform_indices = @transform_0, window_bounds = array<i64: 1, 8, 16>}, {transform_indices = @transform_1, window_bounds = array<i64: 8, 32>}, {pipeline_mode = #tpu.pipeline_mode<synchronous>, transform_indices = @transform_2, window_bounds = array<i64: 16, 96>}, {pipeline_mode = #tpu.pipeline_mode<synchronous>, transform_indices = @transform_3, window_bounds = array<i64: 32, 96>}, {pipeline_mode = #tpu.pipeline_mode<synchronous>, transform_indices = @transform_4, window_bounds = array<i64: 1, 96>}, {pipeline_mode = #tpu.pipeline_mode<synchronous>, transform_indices = @transform_5, window_bounds = array<i64: 1, 32>}, {transform_indices = @transform_6, window_bounds = array<i64: 1, 8, 32>}]} {
    %c0_i32 = arith.constant 0 : i32
    %0 = arith.cmpi eq, %arg1, %c0_i32 : i32
    %1 = arith.extui %0 : i1 to i32
    %c0_i32_0 = arith.constant 0 : i32
    %2 = arith.cmpi ne, %1, %c0_i32_0 : i32
    scf.if %2 {
      %c0_21 = arith.constant 0 : index
      %c0_22 = arith.constant 0 : index
      %42 = vector.load %arg3[%c0_21, %c0_22] : memref<8x32xf32, #tpu.memory_space<vmem>>, vector<8x32xf32>
      %c0_23 = arith.constant 0 : index
      %c0_24 = arith.constant 0 : index
      %43 = vector.load %arg9[%c0_23, %c0_24] : memref<8x32xf32, #tpu.memory_space<vmem>>, vector<8x32xf32>
      tpu.vector_store %arg9[%c0_23, %c0_24], %42 {strides = array<i32>} : memref<8x32xf32, #tpu.memory_space<vmem>>, vector<8x32xf32>,
    } else {
    }
    %c0 = arith.constant 0 : index
    %c0_1 = arith.constant 0 : index
    %3 = vector.load %arg9[%c0, %c0_1] : memref<8x32xf32, #tpu.memory_space<vmem>>, vector<8x32xf32>
    %c0_2 = arith.constant 0 : index
    %c0_3 = arith.constant 0 : index
    %c0_4 = arith.constant 0 : index
    %4 = vector.load %arg2[%c0_2, %c0_3, %c0_4] : memref<1x8x16xf32, #tpu.memory_space<vmem>>, vector<1x8x16xf32>
    %5 = vector.shape_cast %4 : vector<1x8x16xf32> to vector<8x16xf32>
    %6 = arith.truncf %5 : vector<8x16xf32> to vector<8x16xbf16>
    %c0_5 = arith.constant 0 : index
    %c0_6 = arith.constant 0 : index
    %7 = vector.load %arg4[%c0_5, %c0_6] : memref<16x96xbf16, #tpu.memory_space<vmem>>, vector<16x96xbf16>
    %cst = arith.constant dense<0.000000e+00> : vector<8x96xf32>
    %8 = tpu.matmul %6, %7, %cst {dimension_numbers = #tpu.dot_dimension_numbers<[1], [0], [0], [1], [0, 0, 1, 1], [], []>} : vector<8x16xbf16>, vector<16x96xbf16>, vector<8x96xf32> -> vector<8x96xf32>
    %c0_7 = arith.constant 0 : index
    %c0_8 = arith.constant 0 : index
    %9 = vector.load %arg6[%c0_7, %c0_8] : memref<1x96xf32, #tpu.memory_space<vmem>>, vector<1x96xf32>
    %10 = vector.broadcast %9 : vector<1x96xf32> to vector<8x96xf32>
    %11 = arith.addf %8, %10 : vector<8x96xf32>
    %12 = arith.truncf %3 : vector<8x32xf32> to vector<8x32xbf16>
    %c0_9 = arith.constant 0 : index
    %c0_10 = arith.constant 0 : index
    %13 = vector.load %arg5[%c0_9, %c0_10] : memref<32x96xbf16, #tpu.memory_space<vmem>>, vector<32x96xbf16>
    %cst_11 = arith.constant dense<0.000000e+00> : vector<8x96xf32>
    %14 = tpu.matmul %12, %13, %cst_11 {dimension_numbers = #tpu.dot_dimension_numbers<[1], [0], [0], [1], [0, 0, 1, 1], [], []>} : vector<8x32xbf16>, vector<32x96xbf16>, vector<8x96xf32> -> vector<8x96xf32>
    %15 = vector.extract_strided_slice %11 {offsets = [0, 0], sizes = [8, 64], strides = [1, 1]} : vector<8x96xf32> to vector<8x64xf32>
    %16 = vector.extract_strided_slice %14 {offsets = [0, 0], sizes = [8, 64], strides = [1, 1]} : vector<8x96xf32> to vector<8x64xf32>
    %17 = arith.addf %15, %16 : vector<8x64xf32>
    %18 = arith.negf %17 : vector<8x64xf32>
    %19 = math.exp %18 : vector<8x64xf32>
    %cst_12 = arith.constant 1.000000e+00 : f32
    %20 = vector.broadcast %cst_12 : f32 to vector<8x64xf32>
    %21 = arith.addf %20, %19 : vector<8x64xf32>
    %22 = arith.divf %20, %21 : vector<8x64xf32>
    %23 = vector.extract_strided_slice %22 {offsets = [0, 0], sizes = [8, 32], strides = [1, 1]} : vector<8x64xf32> to vector<8x32xf32>
    %24 = vector.extract_strided_slice %22 {offsets = [0, 32], sizes = [8, 32], strides = [1, 1]} : vector<8x64xf32> to vector<8x32xf32>
    %25 = vector.extract_strided_slice %11 {offsets = [0, 64], sizes = [8, 32], strides = [1, 1]} : vector<8x96xf32> to vector<8x32xf32>
    %26 = vector.extract_strided_slice %14 {offsets = [0, 64], sizes = [8, 32], strides = [1, 1]} : vector<8x96xf32> to vector<8x32xf32>
    %c0_13 = arith.constant 0 : index
    %c0_14 = arith.constant 0 : index
    %27 = vector.load %arg7[%c0_13, %c0_14] : memref<1x32xf32, #tpu.memory_space<vmem>>, vector<1x32xf32>
    %28 = vector.broadcast %27 : vector<1x32xf32> to vector<8x32xf32>
    %29 = arith.addf %26, %28 : vector<8x32xf32>
    %30 = arith.mulf %23, %29 : vector<8x32xf32>
    %31 = arith.addf %25, %30 : vector<8x32xf32>
    %32 = math.tanh %31 : vector<8x32xf32>
    %cst_15 = arith.constant 1.000000e+00 : f32
    %33 = vector.broadcast %cst_15 : f32 to vector<8x32xf32>
    %34 = arith.subf %33, %24 : vector<8x32xf32>
    %35 = arith.mulf %34, %32 : vector<8x32xf32>
    %36 = arith.mulf %24, %3 : vector<8x32xf32>
    %37 = arith.addf %35, %36 : vector<8x32xf32>
    %c0_16 = arith.constant 0 : index
    %c0_17 = arith.constant 0 : index
    %38 = vector.load %arg9[%c0_16, %c0_17] : memref<8x32xf32, #tpu.memory_space<vmem>>, vector<8x32xf32>
    tpu.vector_store %arg9[%c0_16, %c0_17], %37 {strides = array<i32>} : memref<8x32xf32, #tpu.memory_space<vmem>>, vector<8x32xf32>,
    %c0_18 = arith.constant 0 : index
    %c0_19 = arith.constant 0 : index
    %c0_20 = arith.constant 0 : index
    %39 = vector.load %arg8[%c0_18, %c0_19, %c0_20] : memref<1x8x32xf32, #tpu.memory_space<vmem>>, vector<1x8x32xf32>
    %40 = vector.shape_cast %39 : vector<1x8x32xf32> to vector<8x32xf32>
    %41 = vector.shape_cast %37 : vector<8x32xf32> to vector<1x8x32xf32>
    tpu.vector_store %arg8[%c0_18, %c0_19, %c0_20], %41 {strides = array<i32>} : memref<1x8x32xf32, #tpu.memory_space<vmem>>, vector<1x8x32xf32>,
    return
  }
  func.func @transform_0(%arg0: i32, %arg1: i32) -> (i32, i32, i32) {
    %c0_i32 = arith.constant 0 : i32
    %c0_i32_0 = arith.constant 0 : i32
    return %arg1, %arg0, %c0_i32 : i32, i32, i32
  }
  func.func @transform_1(%arg0: i32, %arg1: i32) -> (i32, i32) {
    %c0_i32 = arith.constant 0 : i32
    %c0_i32_0 = arith.constant 0 : i32
    return %arg0, %c0_i32 : i32, i32
  }
  func.func @transform_2(%arg0: i32, %arg1: i32) -> (i32, i32) {
    %c0_i32 = arith.constant 0 : i32
    %c0_i32_0 = arith.constant 0 : i32
    %c0_i32_1 = arith.constant 0 : i32
    return %c0_i32, %c0_i32_0 : i32, i32
  }
  func.func @transform_3(%arg0: i32, %arg1: i32) -> (i32, i32) {
    %c0_i32 = arith.constant 0 : i32
    %c0_i32_0 = arith.constant 0 : i32
    %c0_i32_1 = arith.constant 0 : i32
    return %c0_i32, %c0_i32_0 : i32, i32
  }
  func.func @transform_4(%arg0: i32, %arg1: i32) -> (i32, i32) {
    %c0_i32 = arith.constant 0 : i32
    %c0_i32_0 = arith.constant 0 : i32
    %c0_i32_1 = arith.constant 0 : i32
    return %c0_i32, %c0_i32_0 : i32, i32
  }
  func.func @transform_5(%arg0: i32, %arg1: i32) -> (i32, i32) {
    %c0_i32 = arith.constant 0 : i32
    %c0_i32_0 = arith.constant 0 : i32
    %c0_i32_1 = arith.constant 0 : i32
    return %c0_i32, %c0_i32_0 : i32, i32
  }
  func.func @transform_6(%arg0: i32, %arg1: i32) -> (i32, i32, i32) {
    %c0_i32 = arith.constant 0 : i32
    %c0_i32_0 = arith.constant 0 : i32
    return %arg1, %arg0, %c0_i32 : i32, i32, i32
  }
}

</mosaic_0001>

<bundles_post_ra>
// kernel: tpu_custom_call.1
= control target key start
LH: loop header
LB: loop body
LE: loop exit
PB: predicated region body
PF: predicated region fallthrough
CT: control target
= control target key end

     0   :  { %s1548_s0 = inlined_call_operand.hbm [shape: f32[6,16,16], index: 0, kind: input, shape index: {}]   ;;  %s1549_s1 = inlined_call_operand.hbm [shape: f32[16,32], index: 1, kind: input, shape index: {}]   ;;  %s1550_s2 = inlined_call_operand.hbm [shape: bf16[16,96], index: 2, kind: input, shape index: {}]   ;;  %s1551_s3 = inlined_call_operand.hbm [shape: bf16[32,96], index: 3, kind: input, shape index: {}]   ;;  %s1552_s4 = inlined_call_operand.vmem [shape: f32[1,96], index: 4, kind: input, shape index: {}]   ;;  %s1553_s5 = inlined_call_operand.vmem [shape: f32[1,32], index: 5, kind: input, shape index: {}]   ;;  %s1554_s6 = inlined_call_operand.hbm [shape: f32[6,16,32], index: 6, kind: output, shape index: {}]  }
   0x1   :  { %1565 = sst [smem:[#allocation21_spill]] %s1550_s2 }
   0x2   :  { %1566 = sst [smem:[#allocation22_spill]] %s1551_s3 }
   0x3   :  { %1567 = sst [smem:[#allocation23_spill]] %s1552_s4 }
   0x4   :  { %1568 = sst [smem:[#allocation24_spill]] %s1554_s6 }
   0x5   :  { %11 = vsyncpa [#allocation4], 0 }
   0x6   :  { %13 = vsyncpa [#allocation4 + $0x1], 0 }
   0x7   :  { %14 = vsyncpa [#allocation7], 0 }
   0x8   :  { %16 = vsyncpa [#allocation7 + $0x1], 0 }
   0x9   :  { %17 = vsyncpa [#allocation10], 0 }
   0xa   :  { %18 = vsyncpa [#allocation5], 0 }
   0xb   :  { %20 = vsyncpa [#allocation5 + $0x1], 0  ;;  %s1164_s21 = smov 0   ;;  %s1166_s22 = smov 0  }
   0xc   :  { %s1168_s23 = smov 0   ;;  %s1170_s24 = smov 0  }
   0xd   :  { %s1172_s25 = smov 0   ;;  %s1174_s26 = smov 0  }
   0xe   :  { %s1176_s27 = smov 0   ;;  %s1178_s28 = smov 0  }
   0xf   :  { %s1180_s29 = smov 0   ;;  %s1182_s30 = smov 0  }
  0x10   :  { %s1184_s7 = smov 0  }
  0x11 LB: > { %1569 = sst [smem:[#allocation17_spill]] %s1087_s24  ;;  %s1220_s8 = sadd.s32 4294967295, %s1115_s7   ;;  %s1115_s7 = sphi %s1184_s7, %s26_s7   ;;  %s1111_s30 = sphi %s1182_s30, %s1613_s30   ;;  %s1107_s29 = sphi %s1180_s29, %s1612_s29   ;;  %s1103_s28 = sphi %s1178_s28, %s1611_s28   ;;  %s1099_s27 = sphi %s1176_s27, %s1610_s27   ;;  %s1095_s26 = sphi %s1174_s26, %s1609_s26   ;;  %s1091_s25 = sphi %s1172_s25, %s1608_s25   ;;  %s1087_s24 = sphi %s1170_s24, %s1607_s24   ;;  %s1083_s23 = sphi %s1168_s23, %s1606_s23   ;;  %s1079_s22 = sphi %s1166_s22, %s1605_s22   ;;  %s1075_s21 = sphi %s1164_s21, %s1604_s21  }
  0x12   : > { %1570 = sst [smem:[#allocation18_spill]] %s1103_s28  ;;  %p673_p0 = scmp.ge.s32.totalorder %s1115_s7, 1 }
  0x13   : > { %p1555_p1 = scmp.eq.s32.totalorder %s1220_s8, 0  ;;  %p209_p2 = scmp.lt.s32.totalorder %s1115_s7, 13 }
  0x14   : > { %s1117_s10 = smov [#allocation8]   ;;  %s1118_s13 = smov [#allocation9]  }
  0x15   : > { %p1225_p3 = pnand %p673_p0, %p209_p2  ;;  %s221_s11 = sshll.u32 %s1117_s10, 4  ;;  %s222_s11 = int_to_ptr.vmem [resolvable:$true] %s221_s11 }
  0x16   : > { %s234_s14 = sshll.u32 %s1118_s13, 4  ;;  %s1573_s2 = sld [smem:[#allocation21_spill]]  ;;  %s1237_s14 = int_to_ptr.vmem [resolvable:$true] %s234_s14 }
  0x17   : > { %s1571_s9 = scalar_select %p1225_p3, 1, 0 }
  0x18   : > { %p735_p4 = pneg %p1225_p3 }
  0x1a   : > { %p1233_p5 = pnand %p735_p4, %p1555_p1 }
  0x1c   : > { %s865_s17 = scalar_lea.hbm %s1573_s2, 128  ;;  %p867_p7 = pneg %p1233_p5 }
  0x1d   : > { %p866_p6 = scmp.ne.s32.totalorder %s1573_s2, %s865_s17  ;;  %p872_p10 = scmp.lt.u32.totalorder %s865_s17, %s1573_s2 }
  0x1f   : > { %p868_p8 = pnand %p867_p7, %p866_p6 }
  0x21   : > { %p869_p9 = pneg %p868_p8 }
  0x23   : > { %p874_p11 = pnand %p872_p10, %p869_p9 }
  0x25   : > { %877 = shalt.err (!%p874_p11)
}
  0x26   : > { %s878_s13 = scalar_lea.vmem %s222_s11, 128  ;;  %p886_p2 = scmp.lt.s32.totalorder %s222_s11, %s222_s11 }
  0x27   : > { %p879_p12 = scmp.ne.s32.totalorder %s222_s11, %s878_s13  ;;  %p887_p4 = scmp.lt.s32.totalorder %s878_s13, %s878_s13 }
  0x29   : > { %p881_p13 = pnand %p879_p12, %p867_p7  ;;  %p888_p1 = por %p887_p4, %p886_p2 }
  0x2b   : > { %p882_p0 = pneg %p881_p13 }
  0x2d   : > { %p889_p3 = pnand %p888_p1, %p882_p0 }
  0x2f   : > { %892 = shalt.err (!%p889_p3)
}
  0x30   : > { %s1119_s15 = smov 64   ;;  %s1120_s16 = smov 4  }
  0x31   : > { %738 = dma.hbm_to_vmem [thread:$0]  (!%p1233_p5), %s1573_s2, 128, %s222_s11, [#allocation7], %s1119_s15, %s1119_s15, %s1120_s16  }
  0x32   : > { %s1574_s3 = sld [smem:[#allocation22_spill]] }
  0x38   : > { %s893_s10 = scalar_lea.hbm %s1574_s3, 256 }
  0x39   : > { %p894_p6 = scmp.ne.s32.totalorder %s1574_s3, %s893_s10  ;;  %p900_p8 = scmp.lt.u32.totalorder %s893_s10, %s1574_s3 }
  0x3b   : > { %p896_p1 = pnand %p894_p6, %p867_p7 }
  0x3d   : > { %p897_p3 = pneg %p896_p1 }
  0x3f   : > { %p902_p9 = pnand %p900_p8, %p897_p3 }
  0x41   : > { %905 = shalt.err (!%p902_p9)
}
  0x42   : > { %s906_s11 = scalar_lea.vmem %s1237_s14, 256  ;;  %p914_p13 = scmp.lt.s32.totalorder %s1237_s14, %s1237_s14 }
  0x43   : > { %p907_p10 = scmp.ne.s32.totalorder %s1237_s14, %s906_s11  ;;  %p915_p0 = scmp.lt.s32.totalorder %s906_s11, %s906_s11 }
  0x45   : > { %p909_p11 = pnand %p907_p10, %p867_p7  ;;  %p916_p2 = por %p915_p0, %p914_p13 }
  0x47   : > { %p910_p12 = pneg %p909_p11 }
  0x49   : > { %p917_p4 = pnand %p916_p2, %p910_p12 }
  0x4b   : > { %920 = shalt.err (!%p917_p4)
}
  0x4c   : > { %741 = dma.hbm_to_vmem [thread:$0]  (!%p1233_p5), %s1574_s3, 256, %s1237_s14, [#allocation10], %s1119_s15, %s1119_s15, %s1120_s16  }
  0x4d   : > { %s672_s28 = sadd.s32 4294967294, %s1115_s7   ;;  %s35_s12 = sadd.s32 1, %s1107_s29 }
  0x4e   : > { %p36_p7 = scmp.ge.s32.totalorder %s35_s12, 6  ;;  %s38_s17 = sadd.s32 1, %s1111_s30 }
  0x4f   : > { %s47_s18 = sadd.s32 1, %s1095_s26  ;;  %p54_p6 = scmp.ne.s32.totalorder %s1095_s26, %s1091_s25 }
  0x50   : > { %s1615_s12 = smov (%p36_p7, %s35_s12), 0  ;;  %s1617_s17 = smov (!%p36_p7, %s38_s17), %s1111_s30 }
  0x51   : > { %1575 = sst [smem:[#allocation19_spill]] %s1615_s12  ;;  %s42_s19 = ssub.s32 %s1107_s29, %s1615_s12 }
  0x52   : > { %p1562_p1 = scmp.eq.s32.totalorder %s1115_s7, 0  ;;  %p40_p3 = scmp.ge.s32.totalorder %s1617_s17, 2 }
  0x53   : > { %p60_p8 = scmp.ne.s32.totalorder %s1091_s25, %s1087_s24  ;;  %p196_p9 = scmp.eq.s32.totalorder %s1220_s8, 11 }
  0x54   : > { %p1302_p5 = por %p1562_p1, %p54_p6  ;;  %s1619_s17 = smov (%p40_p3, %s1617_s17), 0 }
  0x55   : > { %1577 = sst [smem:[#allocation20_spill]] %s1619_s17  ;;  %p1578_p10 = scmp.eq.s32.totalorder %s1220_s8, 0 }
  0x56   : > { %p1315_p12 = por %p196_p9, %p54_p6  ;;  %s1321_s20 = ssub.s32 %s1111_s30, %s1619_s17 }
  0x57   : > { %p1311_p11 = por %p1578_p10, %p60_p8  ;;  %p202_p13 = scmp.eq.s32.totalorder %s672_s28, 11 }
  0x58   : > { %s1580_s16 = scalar_select %p1315_p12, 1, 0 }
  0x59   : > { %s44_s10 = sor.u32 %s1321_s20, %s42_s19  ;;  %p1325_p4 = por %p202_p13, %p60_p8 }
  0x5a   : > { %p45_p2 = scmp.eq.s32.totalorder %s44_s10, 0  ;;  %p1561_p7 = scmp.lt.s32.totalorder %s1115_s7, 12 }
  0x5b   : > { %s1581_s13 = scalar_select %p1325_p4, 1, 0 }
  0x5c   : > { %s254_s11 = sand.u32 1, %s1095_s26   ;;  %s678_s2 = sshll.u32 %s1107_s29, 1 }
  0x5d   : > { %s1332_s4 = scalar_select %p45_p2, %s1095_s26, %s47_s18  }
  0x5e   : > { %s677_s6 = sshll.u32 %s254_s11, 3  ;;  %s263_s3 = sadd.s32 %s1111_s30, %s678_s2 }
  0x5f   : > { %s258_s17 = scalar_lea.vmem [#allocation3], %s677_s6  ;;  %s679_s24 = sshll.u32 %s263_s3, 7 }
  0x60   : > { %s267_s12 = sshll.u32 %s258_s17, 4  ;;  %s1341_s10 = scalar_lea.hbm %s1548_s0, %s679_s24  ;;  %s1336_s12 = int_to_ptr.vmem [resolvable:$true] %s267_s12 }
  0x61   : > { %p1347_p6 = pnand %p1561_p7, %p1302_p5  ;;  %s255_s2 = scalar_lea.sflag [#allocation4], %s254_s11 }
  0x62   : > { %s921_s3 = scalar_lea.hbm %s1341_s10, 128  ;;  %s926_s14 = scalar_lea.hbm %s1548_s0, 1536 }
  0x63   : > { %p922_p3 = scmp.ne.s32.totalorder %s1341_s10, %s921_s3  ;;  %p923_p8 = pneg %p1347_p6 }
  0x64   : > { %p927_p5 = scmp.lt.u32.totalorder %s1341_s10, %s1548_s0  ;;  %p928_p13 = scmp.lt.u32.totalorder %s926_s14, %s921_s3 }
  0x65   : > { %p924_p9 = pnand %p923_p8, %p922_p3  ;;  %p930_p7 = scmp.lt.u32.totalorder %s921_s3, %s1341_s10 }
  0x66   : > { %p929_p2 = por %p928_p13, %p927_p5 }
  0x67   : > { %p925_p10 = pneg %p924_p9 }
  0x68   : > { %p931_p1 = por %p930_p7, %p929_p2 }
  0x6a   : > { %p932_p0 = pnand %p931_p1, %p925_p10 }
  0x6c   : > { %935 = shalt.err (!%p932_p0)
}
  0x6d   : > { %s936_s11 = scalar_lea.vmem %s1336_s12, 128  ;;  %s1121_s19 = smov [#allocation3]  }
  0x6e   : > { %p937_p3 = scmp.ne.s32.totalorder %s1336_s12, %s936_s11  ;;  %s941_s24 = sshll.u32 %s1121_s19, 4  ;;  %s942_s24 = int_to_ptr.vmem [resolvable:$false] %s941_s24 }
  0x6f   : > { %s943_s17 = scalar_lea.vmem %s942_s24, 256  ;;  %p944_p12 = scmp.lt.s32.totalorder %s1336_s12, %s942_s24 }
  0x70   : > { %p939_p9 = pnand %p937_p3, %p923_p8  ;;  %p945_p5 = scmp.lt.s32.totalorder %s943_s17, %s936_s11 }
  0x72   : > { %p940_p4 = pneg %p939_p9  ;;  %p946_p13 = por %p945_p5, %p944_p12 }
  0x74   : > { %p947_p7 = pnand %p946_p13, %p940_p4 }
  0x76   : > { %950 = shalt.err (!%p947_p7)
}
  0x77   : > { %745 = dma.hbm_to_vmem [thread:$0]  (!%p1347_p6), %s1341_s10, 128, %s1336_s12, %s255_s2  }
  0x78   : > { %s73_s3 = sadd.s32 1, %s1083_s23  ;;  %p1583_p1 = scmp.eq.s32.totalorder %s1321_s20, 0 }
  0x79   : > { %p80_p12 = scmp.ne.s32.totalorder %s1083_s23, %s1079_s22  ;;  %p86_p0 = scmp.ne.s32.totalorder %s1079_s22, %s1075_s21 }
  0x7a   : > { %s1380_s14 = scalar_select %p1583_p1, %s1083_s23, %s73_s3  }
  0x7b   : > { %s274_s18 = sand.u32 1, %s1115_s7   ;;  %s276_s6 = sand.u32 1, %s1083_s23  }
  0x7c   : > { %p1584_p4 = scmp.eq.s32.totalorder %s1115_s7, 0  ;;  %p1585_p10 = scmp.eq.s32.totalorder %s1220_s8, 0 }
  0x7d   : > { %s680_s11 = sshll.u32 %s276_s6, 3  ;;  %s681_s19 = sshll.u32 %s1111_s30, 7 }
  0x7e   : > { %p82_p8 = por %p80_p12, %p1584_p4  ;;  %p1392_p2 = por %p86_p0, %p1585_p10 }
  0x7f   : > { %s1400_s12 = scalar_lea.hbm %s1549_s1, %s681_s19  ;;  %s278_s21 = scalar_lea.vmem [#allocation6], %s680_s11 }
  0x80   : > { %s1586_s28 = scalar_select %p1392_p2, 1, 0 }
  0x81   : > { %s285_s20 = sshll.u32 %s278_s21, 4  ;;  %p1587_p6 = scmp.lt.s32.totalorder %s1115_s7, 12  ;;  %s1402_s20 = int_to_ptr.vmem [resolvable:$true] %s285_s20 }
  0x82   : > { %s275_s2 = scalar_lea.sflag [#allocation7], %s274_s18  ;;  %s951_s3 = scalar_lea.hbm %s1400_s12, 128 }
  0x83   : > { %p1406_p3 = pnand %p1587_p6, %p82_p8  ;;  %p952_p9 = scmp.ne.s32.totalorder %s1400_s12, %s951_s3 }
  0x84   : > { %s956_s19 = scalar_lea.hbm %s1549_s1, 256  ;;  %p957_p1 = scmp.lt.u32.totalorder %s1400_s12, %s1549_s1 }
  0x85   : > { %p953_p5 = pneg %p1406_p3  ;;  %p958_p12 = scmp.lt.u32.totalorder %s956_s19, %s951_s3 }
  0x86   : > { %p960_p4 = scmp.lt.u32.totalorder %s951_s3, %s1400_s12 }
  0x87   : > { %p954_p13 = pnand %p953_p5, %p952_p9  ;;  %p959_p0 = por %p958_p12, %p957_p1 }
  0x89   : > { %p955_p7 = pneg %p954_p13  ;;  %p961_p8 = por %p960_p4, %p959_p0 }
  0x8b   : > { %p962_p10 = pnand %p961_p8, %p955_p7 }
  0x8d   : > { %965 = shalt.err (!%p962_p10)
}
  0x8e   : > { %s966_s18 = scalar_lea.vmem %s1402_s20, 128  ;;  %s1122_s21 = smov [#allocation6]  }
  0x8f   : > { %p967_p6 = scmp.ne.s32.totalorder %s1402_s20, %s966_s18  ;;  %s971_s6 = sshll.u32 %s1122_s21, 4  ;;  %s972_s6 = int_to_ptr.vmem [resolvable:$false] %s971_s6 }
  0x90   : > { %s973_s11 = scalar_lea.vmem %s972_s6, 256  ;;  %p974_p2 = scmp.lt.s32.totalorder %s1402_s20, %s972_s6 }
  0x91   : > { %p969_p9 = pnand %p967_p6, %p953_p5  ;;  %p975_p1 = scmp.lt.s32.totalorder %s973_s11, %s966_s18 }
  0x93   : > { %p970_p13 = pneg %p969_p9  ;;  %p976_p12 = por %p975_p1, %p974_p2 }
  0x95   : > { %p977_p0 = pnand %p976_p12, %p970_p13 }
  0x97   : > { %980 = shalt.err (!%p977_p0)
}
  0x98   : > { %748 = dma.hbm_to_vmem [thread:$0]  (!%p1406_p3), %s1400_s12, 128, %s1402_s20, %s275_s2  }
  0x99   : > { %p1589_p7 = scmp.ne.s32.totalorder %s1571_s9, 0 }
  0x9a   : > { %s1438_s3 = sand.u32 (!%p1589_p7), 1, %s1091_s25  }
  0x9b   : > { %294 = sbr.rel (%p1589_p7) target bundleno = 899 (0x383), region = 44  ;;  %s683_s19 = sshll.u32 (!%p1589_p7), %s1438_s3, 3 }
  0x9c   : > { %s297_s24 = scalar_lea.sflag (!%p1589_p7), [#allocation4], %s1438_s3  ;;  %s1442_s17 = scalar_lea.vmem (!%p1589_p7), [#allocation3], %s683_s19 }
  0xa2   : > { %1054 = dma.done.wait (%p1311_p11), %s297_s24, 128  }
  0xa3   : > { %1056 = vsyncadd (%p1311_p11), %s297_s24, 4294967168  ;;  %s305_s9 = sand.u32 1, %s1220_s8   ;;  %s307_s12 = sand.u32 1, %s1079_s22  }
  0xa4   : > { %s684_s20 = sshll.u32 %s307_s12, 3  ;;  %s306_s10 = scalar_lea.sflag [#allocation7], %s305_s9 }
  0xa5   : > { %s309_s2 = scalar_lea.vmem [#allocation6], %s684_s20  ;;  %p1590_p2 = scmp.ne.s32.totalorder %s1586_s28, 0 }
  0xa7   : > { %1058 = dma.done.wait (%p1590_p2), %s306_s10, 128  }
  0xa8   : > { %1060 = vsyncadd (%p1590_p2), %s306_s10, 4294967168  ;;  %p1591_p3 = scmp.eq.s32.totalorder %s1220_s8, 0 }
  0xaa   : > { %1062 = dma.done.wait (%p1591_p3), [#allocation7], 128   ;;  %p1592_p5 = pmov %p1591_p3 }
  0xab   : > { %p1593_p11 = pmov %p1591_p3 }
  0xac   : > { %1064 = vsyncadd (%p1592_p5), [#allocation7], 4294967168 }
  0xad   : > { %1066 = dma.done.wait (%p1593_p11), [#allocation10], 256   ;;  %p1594_p4 = pmov %p1591_p3 }
  0xae   : > { %s1462_s15 = scalar_lea.vmem [#allocation11], %s683_s19  ;;  %p688_p8 = scmp.ne.s32.totalorder %s1099_s27, 0 }
  0xaf   : > { %1068 = vsyncadd (%p1594_p4), [#allocation10], 4294967040  ;;  %v356_v0 = vld [vmem:[%s309_s2] sm:$0xff] (!%p688_p8)  ;;  %vm357_vm0 = vcmask (!%p688_p8), 261120  }
  0xb0   : > { %355 = sbr.rel (%p688_p8) target bundleno = 183 (0xb7), region = 64  ;;  %358 = vst.msk [vmem:[#allocation2] sm:$0xff] (!%p688_p8), %vm357_vm0, %v356_v0 }
  0xb7 PF: > { %v856_v1 = vld [vmem:[#allocation9] sm:$0xff]   ;;  %v1123_v2 = vmov 0.0   ;;  %v857_v3 = vld [vmem:[#allocation8] sm:$0xff]   ;;  %vm1124_vm1 = vmmov 0   ;;  %v858_v4 = vld [vmem:[#allocation9 + $0x8] sm:$0xff]   ;;  %vm377_vm2 = vcmask 130048  }
  0xb8   : > { %713 = vmatprep.subr.bf16.mxu1 %v1123_v2  ;;  %707 = vmatprep.subr.bf16.mxu0 %v1123_v2  ;;  %v360_v5 = vld [vmem:[%s1442_s17] sm:$0xff]  ;;  %v359_v6 = vld [vmem:[#allocation2] sm:$0xff]  ;;  %s1125_s18 = smov 64   ;;  %vm438_vm3 = vcmask 261120   ;;  %s1126_s21 = smov 32  }
  0xb9   : > { %714 = vmatpush3.bf16.msra.mxu1 %v856_v1  ;;  %709 = vmatprep.mubr.msk.bf16.mxu0 %vm1124_vm1, %v1123_v2  ;;  %v696_v7 = vld [vmem:[%s1553_s5] ss:$0 sm:$0xff]  ;;  %v361_v8 = vpack.c.bf16 %v360_v5, %v360_v5  ;;  %v421_v9 = vpack.c.bf16 %v359_v6, %v359_v6  ;;  %s1595_s19 = sld [smem:[#allocation23_spill]]  ;;  %s1596_s24 = sld [smem:[#allocation18_spill]] }
  0xba   : > { %708 = vmatpush3.bf16.msra.mxu0 %v857_v3  ;;  %715 = vmatprep.subr.bf16.mxu1 %v1123_v2  ;;  %s1127_s17 = smov 96   ;;  %s698_s9 = sshll.u32 %s1099_s27, 1 }
  0xbb   : > { %717 = vmatprep.mubr.msk.bf16.mxu1 %vm1124_vm1, %v1123_v2  ;;  %495 = vrot.lane.b32.xlu0 %v696_v7, %s1125_s18  ;;  %s544_s10 = sshll.u32 %s1462_s15, 4  ;;  %s1597_s28 = sld [smem:[#allocation24_spill]]  ;;  %s1484_s10 = int_to_ptr.vmem [resolvable:$true] %s544_s10 }
  0xbc   : > { %s529_s6 = scalar_lea.sflag [#allocation5], %s1438_s3  ;;  %s981_s27 = scalar_lea.vmem %s1484_s10, 128 }
  0xbd   : > { %716 = vmatpush3.bf16.msra.mxu1 %v858_v4  ;;  %710 = vmatmul.mubr.msk.bf16.vlgmr.msra.gmra.mrb[0].mxu0 %vm377_vm2, %v361_v8  ;;  %p982_p10 = scmp.ne.s32.totalorder %s1484_s10, %s981_s27  ;;  %p1599_p6 = scmp.ne.s32.totalorder %s1580_s16, 0 }
  0xbe   : > { %s1128_s11 = smov [#allocation11]  }
  0xbf   : > { %v689_v20 = vld [vmem:[%s1595_s19] ss:$0 sm:$0xff]  ;;  %s540_s12 = sadd.s32 %s1596_s24, %s698_s9  ;;  %p983_p9 = pnand %p982_p10, %p1599_p6 }
  0xc0   : > { %718 = vmatmul.mubr.msk.bf16.vlgmr.msra.gmra.mrb[0].mxu1 %vm438_vm3, %v421_v9  ;;  %s699_s20 = sshll.u32 %s540_s12, 7  ;;  %s985_s19 = sshll.u32 %s1128_s11, 4  ;;  %s986_s19 = int_to_ptr.vmem [resolvable:$false] %s985_s19 }
  0xc1   : > { %p984_p13 = pneg %p983_p9  ;;  %s987_s24 = scalar_lea.vmem %s986_s19, 256 }
  0xc2   : > { %p988_p1 = scmp.lt.s32.totalorder %s1484_s10, %s986_s19  ;;  %p989_p12 = scmp.lt.s32.totalorder %s987_s24, %s981_s27 }
  0xc4   : > { %p990_p0 = por %p989_p12, %p988_p1 }
  0xc6   : > { %p991_p7 = pnand %p990_p0, %p984_p13 }
 0x12d   : > { %v496_v11 = vpop.permute.xlu0 %495 }
 0x190   : > { %v415_v10 = vpop.f32.mrb[0].mxu0 }
 0x191   : > { %v711_v12 = vpop.f32.mrb[1].mxu0  ;;  %v416_v21 = vadd.f32 %v689_v20, %v415_v10 }
 0x192   : > { %v418_v13 = vpop.f32.mrb[2].mxu0 }
 0x193   : > { %v476_v14 = vpop.f32.mrb[0].mxu1  ;;  %v712_v15 = vpop.f32.mrb[3].mxu0 }
 0x194   : > { %v498_v16 = vadd.f32 %v496_v11, %v476_v14  ;;  %v719_v17 = vpop.f32.mrb[1].mxu1  ;;  %v482_v22 = vadd.f32 %v476_v14, %v416_v21 }
 0x195   : > { %v479_v18 = vpop.f32.mrb[2].mxu1 }
 0x196   : > { %500 = vrot.lane.b32.xlu0 %v498_v16, %s1125_s18  ;;  %v720_v19 = vpop.f32.mrb[3].mxu1  ;;  %v695_v23 = vmul.f32 -1.442695, %v482_v22 }
 0x198   : > { %859 = vpow2.f32 %v695_v23 }
 0x19a   : > { %517 = vrot.lane.b32.xlu0 %v359_v6, %s1126_s21  ;;  %s1482_s21 = scalar_lea.hbm %s1597_s28, %s699_s20 }
 0x1a2   : > { %v860_v24 = vpop.eup %859 }
 0x1a3   : > { %v486_v25 = vadd.f32 1.0, %v860_v24 }
 0x1a5   : > { %861 = vrcp.f32 %v486_v25 }
 0x1af   : > { %v862_v26 = vpop.eup %861 }
 0x1b0   : > { %v510_v33 = vsub.f32 1.0, %v862_v26 }
 0x208   : > { %v501_v27 = vpop.permute.xlu0 %500 }
 0x209   : > { %v503_v28 = vmul.f32 %v862_v26, %v501_v27 }
 0x20b   : > { %505 = vrot.lane.b32.xlu1 %v503_v28, %s1125_s18  ;;  %s1598_s18 = smov %s1597_s28 }
 0x20c   : > { %v518_v32 = vpop.permute.xlu0 %517 }
 0x20d   : > { %v520_v35 = vmul.f32 %v862_v26, %v518_v32 }
 0x27d   : > { %v506_v29 = vpop.permute.xlu1 %505 }
 0x27e   : > { %v508_v30 = vadd.f32 %v506_v29, %v416_v21 }
 0x280   : > { %863 = vtanh.f32 %v508_v30 }
 0x28a   : > { %v864_v31 = vpop.eup %863 }
 0x28b   : > { %512 = vrot.lane.b32.xlu1 %v864_v31, %s1127_s17 }
 0x2fd   : > { %v513_v34 = vpop.permute.xlu1 %512 }
 0x2fe   : > { %v515_v36 = vmul.f32 %v513_v34, %v510_v33 }
 0x300   : > { %v521_v37 = vadd.f32 %v520_v35, %v515_v36 }
 0x302   : > { %523 = vrot.lane.b32.xlu1 %v521_v37, %s1127_s17 }
 0x374   : > { %v524_v38 = vpop.permute.xlu1 %523 }
 0x375   : > { %526 = vst.msk [vmem:[#allocation2] sm:$0xff] %vm438_vm3, %v524_v38  ;;  %527 = vst.msk [vmem:[%s1462_s15] sm:$0xff] %vm438_vm3, %v524_v38 }
 0x376   : > { %994 = shalt.err (!%p991_p7)
}
 0x377   : > { %s995_s3 = scalar_lea.hbm %s1482_s21, 128  ;;  %s999_s9 = scalar_lea.hbm %s1598_s18, 1536 }
 0x378   : > { %p996_p2 = scmp.ne.s32.totalorder %s1482_s21, %s995_s3  ;;  %p1000_p11 = scmp.lt.u32.totalorder %s1482_s21, %s1598_s18 }
 0x379   : > { %p1001_p4 = scmp.lt.u32.totalorder %s999_s9, %s995_s3  ;;  %p1003_p10 = scmp.lt.u32.totalorder %s995_s3, %s1482_s21 }
 0x37a   : > { %p997_p3 = pnand %p996_p2, %p1599_p6 }
 0x37b   : > { %p1002_p8 = por %p1001_p4, %p1000_p11 }
 0x37c   : > { %p998_p5 = pneg %p997_p3 }
 0x37d   : > { %p1004_p9 = por %p1003_p10, %p1002_p8 }
 0x37f   : > { %p1005_p13 = pnand %p1004_p9, %p998_p5 }
 0x381   : > { %1008 = shalt.err (!%p1005_p13)
}
 0x382   : > { %733 = dma.vmem_to_hbm [thread:$0]  (%p1599_p6), %s1484_s10, 128, %s1482_s21, %s529_s6  }
 0x383 PF: > { %s1600_s2 = sld [smem:[#allocation17_spill]]  ;;  %p758_p1 = scmp.ge.s32.totalorder %s1115_s7, 2 }
 0x384   : > { %p1601_p12 = scmp.ne.s32.totalorder %s1581_s13, 0 }
 0x386   : > { %p750_p0 = pnand %p758_p1, %p1601_p12 }
 0x389   : > { %s556_s8 = sand.u32 1, %s1600_s2  }
 0x38a   : > { %s557_s28 = scalar_lea.sflag [#allocation5], %s556_s8 }
 0x38b   : > { %1070 = dma.done.wait (!%p750_p0), %s557_s28, 128  }
 0x38c   : > { %1072 = vsyncadd (!%p750_p0), %s557_s28, 4294967168  ;;  %s26_s7 = sadd.s32 1, %s1115_s7   ;;  %s1602_s16 = sld [smem:[#allocation19_spill]] }
 0x38d   : > { %p23_p7 = scmp.ge.s32.totalorder %s26_s7, 14   ;;  %s1603_s10 = sld [smem:[#allocation20_spill]] }
 0x38e   : > { %s1604_s21 = smov %s1079_s22  ;;  %s1605_s22 = smov %s1083_s23 }
 0x38f   : > { %s1606_s23 = smov %s1380_s14  ;;  %s1607_s24 = smov %s1091_s25 }
 0x390   : > { %s1608_s25 = smov %s1095_s26  ;;  %s1609_s26 = smov %s1332_s4 }
 0x391   : > { %s1610_s27 = smov %s1107_s29  ;;  %s1611_s28 = smov %s1111_s30 }
 0x392   : > { %s1612_s29 = smov %s1602_s16  ;;  %25 = sbr.rel (!%p23_p7) target bundleno = 17 (0x11), region = 114 }
 0x393   : > { %s1613_s30 = smov %s1603_s10 }
 0x399   :  { %562 = vsyncpa [#allocation4], 1 }
 0x39a   :  { %564 = vsyncpa [#allocation4 + $0x1], 1 }
 0x39b   :  { %565 = vsyncpa [#allocation7], 1 }
 0x39c   :  { %567 = vsyncpa [#allocation7 + $0x1], 1 }
 0x39d   :  { %568 = vsyncpa [#allocation10], 1 }
 0x39e   :  { %569 = vsyncpa [#allocation5], 1 }
 0x39f   :  { %571 = vsyncpa [#allocation5 + $0x1], 1 }

// kernel: tpu_custom_call.1
= control target key start
LH: loop header
LB: loop body
LE: loop exit
PB: predicated region body
PF: predicated region fallthrough
CT: control target
= control target key end

     0   :  { %s1548_s0 = inlined_call_operand.hbm [shape: f32[6,16,16], index: 0, kind: input, shape index: {}]   ;;  %s1549_s1 = inlined_call_operand.hbm [shape: f32[16,32], index: 1, kind: input, shape index: {}]   ;;  %s1550_s2 = inlined_call_operand.hbm [shape: bf16[16,96], index: 2, kind: input, shape index: {}]   ;;  %s1551_s3 = inlined_call_operand.hbm [shape: bf16[32,96], index: 3, kind: input, shape index: {}]   ;;  %s1552_s4 = inlined_call_operand.vmem [shape: f32[1,96], index: 4, kind: input, shape index: {}]   ;;  %s1553_s5 = inlined_call_operand.vmem [shape: f32[1,32], index: 5, kind: input, shape index: {}]   ;;  %s1554_s6 = inlined_call_operand.hbm [shape: f32[6,16,32], index: 6, kind: output, shape index: {}]  }
   0x1   :  { %1565 = sst [smem:[#allocation21_spill]] %s1550_s2 }
   0x2   :  { %1566 = sst [smem:[#allocation22_spill]] %s1551_s3 }
   0x3   :  { %1567 = sst [smem:[#allocation23_spill]] %s1552_s4 }
   0x4   :  { %1568 = sst [smem:[#allocation24_spill]] %s1554_s6 }
   0x5   :  { %11 = vsyncpa [#allocation4], 0 }
   0x6   :  { %13 = vsyncpa [#allocation4 + $0x1], 0 }
   0x7   :  { %14 = vsyncpa [#allocation7], 0 }
   0x8   :  { %16 = vsyncpa [#allocation7 + $0x1], 0 }
   0x9   :  { %17 = vsyncpa [#allocation10], 0 }
   0xa   :  { %18 = vsyncpa [#allocation5], 0 }
   0xb   :  { %20 = vsyncpa [#allocation5 + $0x1], 0  ;;  %s1164_s21 = smov 0   ;;  %s1166_s22 = smov 0  }
   0xc   :  { %s1168_s23 = smov 0   ;;  %s1170_s24 = smov 0  }
   0xd   :  { %s1172_s25 = smov 0   ;;  %s1174_s26 = smov 0  }
   0xe   :  { %s1176_s27 = smov 0   ;;  %s1178_s28 = smov 0  }
   0xf   :  { %s1180_s29 = smov 0   ;;  %s1182_s30 = smov 0  }
  0x10   :  { %s1184_s7 = smov 0  }
  0x11 LB: > { %1569 = sst [smem:[#allocation17_spill]] %s1087_s24  ;;  %s1220_s8 = sadd.s32 4294967295, %s1115_s7   ;;  %s1115_s7 = sphi %s1184_s7, %s26_s7   ;;  %s1111_s30 = sphi %s1182_s30, %s1613_s30   ;;  %s1107_s29 = sphi %s1180_s29, %s1612_s29   ;;  %s1103_s28 = sphi %s1178_s28, %s1611_s28   ;;  %s1099_s27 = sphi %s1176_s27, %s1610_s27   ;;  %s1095_s26 = sphi %s1174_s26, %s1609_s26   ;;  %s1091_s25 = sphi %s1172_s25, %s1608_s25   ;;  %s1087_s24 = sphi %s1170_s24, %s1607_s24   ;;  %s1083_s23 = sphi %s1168_s23, %s1606_s23   ;;  %s1079_s22 = sphi %s1166_s22, %s1605_s22   ;;  %s1075_s21 = sphi %s1164_s21, %s1604_s21  }
  0x12   : > { %1570 = sst [smem:[#allocation18_spill]] %s1103_s28  ;;  %p673_p0 = scmp.ge.s32.totalorder %s1115_s7, 1 }
  0x13   : > { %p1555_p1 = scmp.eq.s32.totalorder %s1220_s8, 0  ;;  %p209_p2 = scmp.lt.s32.totalorder %s1115_s7, 13 }
  0x14   : > { %s1117_s10 = smov [#allocation8]   ;;  %s1118_s13 = smov [#allocation9]  }
  0x15   : > { %p1225_p3 = pnand %p673_p0, %p209_p2  ;;  %s221_s11 = sshll.u32 %s1117_s10, 4  ;;  %s222_s11 = int_to_ptr.vmem [resolvable:$true] %s221_s11 }
  0x16   : > { %s234_s14 = sshll.u32 %s1118_s13, 4  ;;  %s1573_s2 = sld [smem:[#allocation21_spill]]  ;;  %s1237_s14 = int_to_ptr.vmem [resolvable:$true] %s234_s14 }
  0x17   : > { %s1571_s9 = scalar_select %p1225_p3, 1, 0 }
  0x18   : > { %p735_p4 = pneg %p1225_p3 }
  0x1a   : > { %p1233_p5 = pnand %p735_p4, %p1555_p1 }
  0x1c   : > { %s865_s17 = scalar_lea.hbm %s1573_s2, 128  ;;  %p867_p7 = pneg %p1233_p5 }
  0x1d   : > { %p866_p6 = scmp.ne.s32.totalorder %s1573_s2, %s865_s17  ;;  %p872_p10 = scmp.lt.u32.totalorder %s865_s17, %s1573_s2 }
  0x1f   : > { %p868_p8 = pnand %p867_p7, %p866_p6 }
  0x21   : > { %p869_p9 = pneg %p868_p8 }
  0x23   : > { %p874_p11 = pnand %p872_p10, %p869_p9 }
  0x25   : > { %877 = shalt.err (!%p874_p11)
}
  0x26   : > { %s878_s13 = scalar_lea.vmem %s222_s11, 128  ;;  %p886_p2 = scmp.lt.s32.totalorder %s222_s11, %s222_s11 }
  0x27   : > { %p879_p12 = scmp.ne.s32.totalorder %s222_s11, %s878_s13  ;;  %p887_p4 = scmp.lt.s32.totalorder %s878_s13, %s878_s13 }
  0x29   : > { %p881_p13 = pnand %p879_p12, %p867_p7  ;;  %p888_p1 = por %p887_p4, %p886_p2 }
  0x2b   : > { %p882_p0 = pneg %p881_p13 }
  0x2d   : > { %p889_p3 = pnand %p888_p1, %p882_p0 }
  0x2f   : > { %892 = shalt.err (!%p889_p3)
}
  0x30   : > { %s1119_s15 = smov 64   ;;  %s1120_s16 = smov 4  }
  0x31   : > { %738 = dma.hbm_to_vmem [thread:$0]  (!%p1233_p5), %s1573_s2, 128, %s222_s11, [#allocation7], %s1119_s15, %s1119_s15, %s1120_s16  }
  0x32   : > { %s1574_s3 = sld [smem:[#allocation22_spill]] }
  0x38   : > { %s893_s10 = scalar_lea.hbm %s1574_s3, 256 }
  0x39   : > { %p894_p6 = scmp.ne.s32.totalorder %s1574_s3, %s893_s10  ;;  %p900_p8 = scmp.lt.u32.totalorder %s893_s10, %s1574_s3 }
  0x3b   : > { %p896_p1 = pnand %p894_p6, %p867_p7 }
  0x3d   : > { %p897_p3 = pneg %p896_p1 }
  0x3f   : > { %p902_p9 = pnand %p900_p8, %p897_p3 }
  0x41   : > { %905 = shalt.err (!%p902_p9)
}
  0x42   : > { %s906_s11 = scalar_lea.vmem %s1237_s14, 256  ;;  %p914_p13 = scmp.lt.s32.totalorder %s1237_s14, %s1237_s14 }
  0x43   : > { %p907_p10 = scmp.ne.s32.totalorder %s1237_s14, %s906_s11  ;;  %p915_p0 = scmp.lt.s32.totalorder %s906_s11, %s906_s11 }
  0x45   : > { %p909_p11 = pnand %p907_p10, %p867_p7  ;;  %p916_p2 = por %p915_p0, %p914_p13 }
  0x47   : > { %p910_p12 = pneg %p909_p11 }
  0x49   : > { %p917_p4 = pnand %p916_p2, %p910_p12 }
  0x4b   : > { %920 = shalt.err (!%p917_p4)
}
  0x4c   : > { %741 = dma.hbm_to_vmem [thread:$0]  (!%p1233_p5), %s1574_s3, 256, %s1237_s14, [#allocation10], %s1119_s15, %s1119_s15, %s1120_s16  }
  0x4d   : > { %s672_s28 = sadd.s32 4294967294, %s1115_s7   ;;  %s35_s12 = sadd.s32 1, %s1107_s29 }
  0x4e   : > { %p36_p7 = scmp.ge.s32.totalorder %s35_s12, 6  ;;  %s38_s17 = sadd.s32 1, %s1111_s30 }
  0x4f   : > { %s47_s18 = sadd.s32 1, %s1095_s26  ;;  %p54_p6 = scmp.ne.s32.totalorder %s1095_s26, %s1091_s25 }
  0x50   : > { %s1615_s12 = smov (%p36_p7, %s35_s12), 0  ;;  %s1617_s17 = smov (!%p36_p7, %s38_s17), %s1111_s30 }
  0x51   : > { %1575 = sst [smem:[#allocation19_spill]] %s1615_s12  ;;  %s42_s19 = ssub.s32 %s1107_s29, %s1615_s12 }
  0x52   : > { %p1562_p1 = scmp.eq.s32.totalorder %s1115_s7, 0  ;;  %p40_p3 = scmp.ge.s32.totalorder %s1617_s17, 2 }
  0x53   : > { %p60_p8 = scmp.ne.s32.totalorder %s1091_s25, %s1087_s24  ;;  %p196_p9 = scmp.eq.s32.totalorder %s1220_s8, 11 }
  0x54   : > { %p1302_p5 = por %p1562_p1, %p54_p6  ;;  %s1619_s17 = smov (%p40_p3, %s1617_s17), 0 }
  0x55   : > { %1577 = sst [smem:[#allocation20_spill]] %s1619_s17  ;;  %p1578_p10 = scmp.eq.s32.totalorder %s1220_s8, 0 }
  0x56   : > { %p1315_p12 = por %p196_p9, %p54_p6  ;;  %s1321_s20 = ssub.s32 %s1111_s30, %s1619_s17 }
  0x57   : > { %p1311_p11 = por %p1578_p10, %p60_p8  ;;  %p202_p13 = scmp.eq.s32.totalorder %s672_s28, 11 }
  0x58   : > { %s1580_s16 = scalar_select %p1315_p12, 1, 0 }
  0x59   : > { %s44_s10 = sor.u32 %s1321_s20, %s42_s19  ;;  %p1325_p4 = por %p202_p13, %p60_p8 }
  0x5a   : > { %p45_p2 = scmp.eq.s32.totalorder %s44_s10, 0  ;;  %p1561_p7 = scmp.lt.s32.totalorder %s1115_s7, 12 }
  0x5b   : > { %s1581_s13 = scalar_select %p1325_p4, 1, 0 }
  0x5c   : > { %s254_s11 = sand.u32 1, %s1095_s26   ;;  %s678_s2 = sshll.u32 %s1107_s29, 1 }
  0x5d   : > { %s1332_s4 = scalar_select %p45_p2, %s1095_s26, %s47_s18  }
  0x5e   : > { %s677_s6 = sshll.u32 %s254_s11, 3  ;;  %s263_s3 = sadd.s32 %s1111_s30, %s678_s2 }
  0x5f   : > { %s258_s17 = scalar_lea.vmem [#allocation3], %s677_s6  ;;  %s679_s24 = sshll.u32 %s263_s3, 7 }
  0x60   : > { %s267_s12 = sshll.u32 %s258_s17, 4  ;;  %s1341_s10 = scalar_lea.hbm %s1548_s0, %s679_s24  ;;  %s1336_s12 = int_to_ptr.vmem [resolvable:$true] %s267_s12 }
  0x61   : > { %p1347_p6 = pnand %p1561_p7, %p1302_p5  ;;  %s255_s2 = scalar_lea.sflag [#allocation4], %s254_s11 }
  0x62   : > { %s921_s3 = scalar_lea.hbm %s1341_s10, 128  ;;  %s926_s14 = scalar_lea.hbm %s1548_s0, 1536 }
  0x63   : > { %p922_p3 = scmp.ne.s32.totalorder %s1341_s10, %s921_s3  ;;  %p923_p8 = pneg %p1347_p6 }
  0x64   : > { %p927_p5 = scmp.lt.u32.totalorder %s1341_s10, %s1548_s0  ;;  %p928_p13 = scmp.lt.u32.totalorder %s926_s14, %s921_s3 }
  0x65   : > { %p924_p9 = pnand %p923_p8, %p922_p3  ;;  %p930_p7 = scmp.lt.u32.totalorder %s921_s3, %s1341_s10 }
  0x66   : > { %p929_p2 = por %p928_p13, %p927_p5 }
  0x67   : > { %p925_p10 = pneg %p924_p9 }
  0x68   : > { %p931_p1 = por %p930_p7, %p929_p2 }
  0x6a   : > { %p932_p0 = pnand %p931_p1, %p925_p10 }
  0x6c   : > { %935 = shalt.err (!%p932_p0)
}
  0x6d   : > { %s936_s11 = scalar_lea.vmem %s1336_s12, 128  ;;  %s1121_s19 = smov [#allocation3]  }
  0x6e   : > { %p937_p3 = scmp.ne.s32.totalorder %s1336_s12, %s936_s11  ;;  %s941_s24 = sshll.u32 %s1121_s19, 4  ;;  %s942_s24 = int_to_ptr.vmem [resolvable:$false] %s941_s24 }
  0x6f   : > { %s943_s17 = scalar_lea.vmem %s942_s24, 256  ;;  %p944_p12 = scmp.lt.s32.totalorder %s1336_s12, %s942_s24 }
  0x70   : > { %p939_p9 = pnand %p937_p3, %p923_p8  ;;  %p945_p5 = scmp.lt.s32.totalorder %s943_s17, %s936_s11 }
  0x72   : > { %p940_p4 = pneg %p939_p9  ;;  %p946_p13 = por %p945_p5, %p944_p12 }
  0x74   : > { %p947_p7 = pnand %p946_p13, %p940_p4 }
  0x76   : > { %950 = shalt.err (!%p947_p7)
}
  0x77   : > { %745 = dma.hbm_to_vmem [thread:$0]  (!%p1347_p6), %s1341_s10, 128, %s1336_s12, %s255_s2  }
  0x78   : > { %s73_s3 = sadd.s32 1, %s1083_s23  ;;  %p1583_p1 = scmp.eq.s32.totalorder %s1321_s20, 0 }
  0x79   : > { %p80_p12 = scmp.ne.s32.totalorder %s1083_s23, %s1079_s22  ;;  %p86_p0 = scmp.ne.s32.totalorder %s1079_s22, %s1075_s21 }
  0x7a   : > { %s1380_s14 = scalar_select %p1583_p1, %s1083_s23, %s73_s3  }
  0x7b   : > { %s274_s18 = sand.u32 1, %s1115_s7   ;;  %s276_s6 = sand.u32 1, %s1083_s23  }
  0x7c   : > { %p1584_p4 = scmp.eq.s32.totalorder %s1115_s7, 0  ;;  %p1585_p10 = scmp.eq.s32.totalorder %s1220_s8, 0 }
  0x7d   : > { %s680_s11 = sshll.u32 %s276_s6, 3  ;;  %s681_s19 = sshll.u32 %s1111_s30, 7 }
  0x7e   : > { %p82_p8 = por %p80_p12, %p1584_p4  ;;  %p1392_p2 = por %p86_p0, %p1585_p10 }
  0x7f   : > { %s1400_s12 = scalar_lea.hbm %s1549_s1, %s681_s19  ;;  %s278_s21 = scalar_lea.vmem [#allocation6], %s680_s11 }
  0x80   : > { %s1586_s28 = scalar_select %p1392_p2, 1, 0 }
  0x81   : > { %s285_s20 = sshll.u32 %s278_s21, 4  ;;  %p1587_p6 = scmp.lt.s32.totalorder %s1115_s7, 12  ;;  %s1402_s20 = int_to_ptr.vmem [resolvable:$true] %s285_s20 }
  0x82   : > { %s275_s2 = scalar_lea.sflag [#allocation7], %s274_s18  ;;  %s951_s3 = scalar_lea.hbm %s1400_s12, 128 }
  0x83   : > { %p1406_p3 = pnand %p1587_p6, %p82_p8  ;;  %p952_p9 = scmp.ne.s32.totalorder %s1400_s12, %s951_s3 }
  0x84   : > { %s956_s19 = scalar_lea.hbm %s1549_s1, 256  ;;  %p957_p1 = scmp.lt.u32.totalorder %s1400_s12, %s1549_s1 }
  0x85   : > { %p953_p5 = pneg %p1406_p3  ;;  %p958_p12 = scmp.lt.u32.totalorder %s956_s19, %s951_s3 }
  0x86   : > { %p960_p4 = scmp.lt.u32.totalorder %s951_s3, %s1400_s12 }
  0x87   : > { %p954_p13 = pnand %p953_p5, %p952_p9  ;;  %p959_p0 = por %p958_p12, %p957_p1 }
  0x89   : > { %p955_p7 = pneg %p954_p13  ;;  %p961_p8 = por %p960_p4, %p959_p0 }
  0x8b   : > { %p962_p10 = pnand %p961_p8, %p955_p7 }
  0x8d   : > { %965 = shalt.err (!%p962_p10)
}
  0x8e   : > { %s966_s18 = scalar_lea.vmem %s1402_s20, 128  ;;  %s1122_s21 = smov [#allocation6]  }
  0x8f   : > { %p967_p6 = scmp.ne.s32.totalorder %s1402_s20, %s966_s18  ;;  %s971_s6 = sshll.u32 %s1122_s21, 4  ;;  %s972_s6 = int_to_ptr.vmem [resolvable:$false] %s971_s6 }
  0x90   : > { %s973_s11 = scalar_lea.vmem %s972_s6, 256  ;;  %p974_p2 = scmp.lt.s32.totalorder %s1402_s20, %s972_s6 }
  0x91   : > { %p969_p9 = pnand %p967_p6, %p953_p5  ;;  %p975_p1 = scmp.lt.s32.totalorder %s973_s11, %s966_s18 }
  0x93   : > { %p970_p13 = pneg %p969_p9  ;;  %p976_p12 = por %p975_p1, %p974_p2 }
  0x95   : > { %p977_p0 = pnand %p976_p12, %p970_p13 }
  0x97   : > { %980 = shalt.err (!%p977_p0)
}
  0x98   : > { %748 = dma.hbm_to_vmem [thread:$0]  (!%p1406_p3), %s1400_s12, 128, %s1402_s20, %s275_s2  }
  0x99   : > { %p1589_p7 = scmp.ne.s32.totalorder %s1571_s9, 0 }
  0x9a   : > { %s1438_s3 = sand.u32 (!%p1589_p7), 1, %s1091_s25  }
  0x9b   : > { %294 = sbr.rel (%p1589_p7) target bundleno = 899 (0x383), region = 44  ;;  %s683_s19 = sshll.u32 (!%p1589_p7), %s1438_s3, 3 }
  0x9c   : > { %s297_s24 = scalar_lea.sflag (!%p1589_p7), [#allocation4], %s1438_s3  ;;  %s1442_s17 = scalar_lea.vmem (!%p1589_p7), [#allocation3], %s683_s19 }
  0xa2   : > { %1054 = dma.done.wait (%p1311_p11), %s297_s24, 128  }
  0xa3   : > { %1056 = vsyncadd (%p1311_p11), %s297_s24, 4294967168  ;;  %s305_s9 = sand.u32 1, %s1220_s8   ;;  %s307_s12 = sand.u32 1, %s1079_s22  }
  0xa4   : > { %s684_s20 = sshll.u32 %s307_s12, 3  ;;  %s306_s10 = scalar_lea.sflag [#allocation7], %s305_s9 }
  0xa5   : > { %s309_s2 = scalar_lea.vmem [#allocation6], %s684_s20  ;;  %p1590_p2 = scmp.ne.s32.totalorder %s1586_s28, 0 }
  0xa7   : > { %1058 = dma.done.wait (%p1590_p2), %s306_s10, 128  }
  0xa8   : > { %1060 = vsyncadd (%p1590_p2), %s306_s10, 4294967168  ;;  %p1591_p3 = scmp.eq.s32.totalorder %s1220_s8, 0 }
  0xaa   : > { %1062 = dma.done.wait (%p1591_p3), [#allocation7], 128   ;;  %p1592_p5 = pmov %p1591_p3 }
  0xab   : > { %p1593_p11 = pmov %p1591_p3 }
  0xac   : > { %1064 = vsyncadd (%p1592_p5), [#allocation7], 4294967168 }
  0xad   : > { %1066 = dma.done.wait (%p1593_p11), [#allocation10], 256   ;;  %p1594_p4 = pmov %p1591_p3 }
  0xae   : > { %s1462_s15 = scalar_lea.vmem [#allocation11], %s683_s19  ;;  %p688_p8 = scmp.ne.s32.totalorder %s1099_s27, 0 }
  0xaf   : > { %1068 = vsyncadd (%p1594_p4), [#allocation10], 4294967040  ;;  %v356_v0 = vld [vmem:[%s309_s2] sm:$0xff] (!%p688_p8)  ;;  %vm357_vm0 = vcmask (!%p688_p8), 261120  }
  0xb0   : > { %355 = sbr.rel (%p688_p8) target bundleno = 183 (0xb7), region = 64  ;;  %358 = vst.msk [vmem:[#allocation2] sm:$0xff] (!%p688_p8), %vm357_vm0, %v356_v0 }
  0xb7 PF: > { %v856_v1 = vld [vmem:[#allocation9] sm:$0xff]   ;;  %v1123_v2 = vmov 0.0   ;;  %v857_v3 = vld [vmem:[#allocation8] sm:$0xff]   ;;  %vm1124_vm1 = vmmov 0   ;;  %v858_v4 = vld [vmem:[#allocation9 + $0x8] sm:$0xff]   ;;  %vm377_vm2 = vcmask 130048  }
  0xb8   : > { %713 = vmatprep.subr.bf16.mxu1 %v1123_v2  ;;  %707 = vmatprep.subr.bf16.mxu0 %v1123_v2  ;;  %v360_v5 = vld [vmem:[%s1442_s17] sm:$0xff]  ;;  %v359_v6 = vld [vmem:[#allocation2] sm:$0xff]  ;;  %s1125_s18 = smov 64   ;;  %vm438_vm3 = vcmask 261120   ;;  %s1126_s21 = smov 32  }
  0xb9   : > { %714 = vmatpush3.bf16.msra.mxu1 %v856_v1  ;;  %709 = vmatprep.mubr.msk.bf16.mxu0 %vm1124_vm1, %v1123_v2  ;;  %v696_v7 = vld [vmem:[%s1553_s5] ss:$0 sm:$0xff]  ;;  %v361_v8 = vpack.c.bf16 %v360_v5, %v360_v5  ;;  %v421_v9 = vpack.c.bf16 %v359_v6, %v359_v6  ;;  %s1595_s19 = sld [smem:[#allocation23_spill]]  ;;  %s1596_s24 = sld [smem:[#allocation18_spill]] }
  0xba   : > { %708 = vmatpush3.bf16.msra.mxu0 %v857_v3  ;;  %715 = vmatprep.subr.bf16.mxu1 %v1123_v2  ;;  %s1127_s17 = smov 96   ;;  %s698_s9 = sshll.u32 %s1099_s27, 1 }
  0xbb   : > { %717 = vmatprep.mubr.msk.bf16.mxu1 %vm1124_vm1, %v1123_v2  ;;  %495 = vrot.lane.b32.xlu0 %v696_v7, %s1125_s18  ;;  %s544_s10 = sshll.u32 %s1462_s15, 4  ;;  %s1597_s28 = sld [smem:[#allocation24_spill]]  ;;  %s1484_s10 = int_to_ptr.vmem [resolvable:$true] %s544_s10 }
  0xbc   : > { %s529_s6 = scalar_lea.sflag [#allocation5], %s1438_s3  ;;  %s981_s27 = scalar_lea.vmem %s1484_s10, 128 }
  0xbd   : > { %716 = vmatpush3.bf16.msra.mxu1 %v858_v4  ;;  %710 = vmatmul.mubr.msk.bf16.vlgmr.msra.gmra.mrb[0].mxu0 %vm377_vm2, %v361_v8  ;;  %p982_p10 = scmp.ne.s32.totalorder %s1484_s10, %s981_s27  ;;  %p1599_p6 = scmp.ne.s32.totalorder %s1580_s16, 0 }
  0xbe   : > { %s1128_s11 = smov [#allocation11]  }
  0xbf   : > { %v689_v20 = vld [vmem:[%s1595_s19] ss:$0 sm:$0xff]  ;;  %s540_s12 = sadd.s32 %s1596_s24, %s698_s9  ;;  %p983_p9 = pnand %p982_p10, %p1599_p6 }
  0xc0   : > { %718 = vmatmul.mubr.msk.bf16.vlgmr.msra.gmra.mrb[0].mxu1 %vm438_vm3, %v421_v9  ;;  %s699_s20 = sshll.u32 %s540_s12, 7  ;;  %s985_s19 = sshll.u32 %s1128_s11, 4  ;;  %s986_s19 = int_to_ptr.vmem [resolvable:$false] %s985_s19 }
  0xc1   : > { %p984_p13 = pneg %p983_p9  ;;  %s987_s24 = scalar_lea.vmem %s986_s19, 256 }
  0xc2   : > { %p988_p1 = scmp.lt.s32.totalorder %s1484_s10, %s986_s19  ;;  %p989_p12 = scmp.lt.s32.totalorder %s987_s24, %s981_s27 }
  0xc4   : > { %p990_p0 = por %p989_p12, %p988_p1 }
  0xc6   : > { %p991_p7 = pnand %p990_p0, %p984_p13 }
 0x12d   : > { %v496_v11 = vpop.permute.xlu0 %495 }
 0x190   : > { %v415_v10 = vpop.f32.mrb[0].mxu0 }
 0x191   : > { %v711_v12 = vpop.f32.mrb[1].mxu0  ;;  %v416_v21 = vadd.f32 %v689_v20, %v415_v10 }
 0x192   : > { %v418_v13 = vpop.f32.mrb[2].mxu0 }
 0x193   : > { %v476_v14 = vpop.f32.mrb[0].mxu1  ;;  %v712_v15 = vpop.f32.mrb[3].mxu0 }
 0x194   : > { %v498_v16 = vadd.f32 %v496_v11, %v476_v14  ;;  %v719_v17 = vpop.f32.mrb[1].mxu1  ;;  %v482_v22 = vadd.f32 %v476_v14, %v416_v21 }
 0x195   : > { %v479_v18 = vpop.f32.mrb[2].mxu1 }
 0x196   : > { %500 = vrot.lane.b32.xlu0 %v498_v16, %s1125_s18  ;;  %v720_v19 = vpop.f32.mrb[3].mxu1  ;;  %v695_v23 = vmul.f32 -1.442695, %v482_v22 }
 0x198   : > { %859 = vpow2.f32 %v695_v23 }
 0x19a   : > { %517 = vrot.lane.b32.xlu0 %v359_v6, %s1126_s21  ;;  %s1482_s21 = scalar_lea.hbm %s1597_s28, %s699_s20 }
 0x1a2   : > { %v860_v24 = vpop.eup %859 }
 0x1a3   : > { %v486_v25 = vadd.f32 1.0, %v860_v24 }
 0x1a5   : > { %861 = vrcp.f32 %v486_v25 }
 0x1af   : > { %v862_v26 = vpop.eup %861 }
 0x1b0   : > { %v510_v33 = vsub.f32 1.0, %v862_v26 }
 0x208   : > { %v501_v27 = vpop.permute.xlu0 %500 }
 0x209   : > { %v503_v28 = vmul.f32 %v862_v26, %v501_v27 }
 0x20b   : > { %505 = vrot.lane.b32.xlu1 %v503_v28, %s1125_s18  ;;  %s1598_s18 = smov %s1597_s28 }
 0x20c   : > { %v518_v32 = vpop.permute.xlu0 %517 }
 0x20d   : > { %v520_v35 = vmul.f32 %v862_v26, %v518_v32 }
 0x27d   : > { %v506_v29 = vpop.permute.xlu1 %505 }
 0x27e   : > { %v508_v30 = vadd.f32 %v506_v29, %v416_v21 }
 0x280   : > { %863 = vtanh.f32 %v508_v30 }
 0x28a   : > { %v864_v31 = vpop.eup %863 }
 0x28b   : > { %512 = vrot.lane.b32.xlu1 %v864_v31, %s1127_s17 }
 0x2fd   : > { %v513_v34 = vpop.permute.xlu1 %512 }
 0x2fe   : > { %v515_v36 = vmul.f32 %v513_v34, %v510_v33 }
 0x300   : > { %v521_v37 = vadd.f32 %v520_v35, %v515_v36 }
 0x302   : > { %523 = vrot.lane.b32.xlu1 %v521_v37, %s1127_s17 }
 0x374   : > { %v524_v38 = vpop.permute.xlu1 %523 }
 0x375   : > { %526 = vst.msk [vmem:[#allocation2] sm:$0xff] %vm438_vm3, %v524_v38  ;;  %527 = vst.msk [vmem:[%s1462_s15] sm:$0xff] %vm438_vm3, %v524_v38 }
 0x376   : > { %994 = shalt.err (!%p991_p7)
}
 0x377   : > { %s995_s3 = scalar_lea.hbm %s1482_s21, 128  ;;  %s999_s9 = scalar_lea.hbm %s1598_s18, 1536 }
 0x378   : > { %p996_p2 = scmp.ne.s32.totalorder %s1482_s21, %s995_s3  ;;  %p1000_p11 = scmp.lt.u32.totalorder %s1482_s21, %s1598_s18 }
 0x379   : > { %p1001_p4 = scmp.lt.u32.totalorder %s999_s9, %s995_s3  ;;  %p1003_p10 = scmp.lt.u32.totalorder %s995_s3, %s1482_s21 }
 0x37a   : > { %p997_p3 = pnand %p996_p2, %p1599_p6 }
 0x37b   : > { %p1002_p8 = por %p1001_p4, %p1000_p11 }
 0x37c   : > { %p998_p5 = pneg %p997_p3 }
 0x37d   : > { %p1004_p9 = por %p1003_p10, %p1002_p8 }
 0x37f   : > { %p1005_p13 = pnand %p1004_p9, %p998_p5 }
 0x381   : > { %1008 = shalt.err (!%p1005_p13)
}
 0x382   : > { %733 = dma.vmem_to_hbm [thread:$0]  (%p1599_p6), %s1484_s10, 128, %s1482_s21, %s529_s6  }
 0x383 PF: > { %s1600_s2 = sld [smem:[#allocation17_spill]]  ;;  %p758_p1 = scmp.ge.s32.totalorder %s1115_s7, 2 }
 0x384   : > { %p1601_p12 = scmp.ne.s32.totalorder %s1581_s13, 0 }
 0x386   : > { %p750_p0 = pnand %p758_p1, %p1601_p12 }
 0x389   : > { %s556_s8 = sand.u32 1, %s1600_s2  }
 0x38a   : > { %s557_s28 = scalar_lea.sflag [#allocation5], %s556_s8 }
 0x38b   : > { %1070 = dma.done.wait (!%p750_p0), %s557_s28, 128  }
 0x38c   : > { %1072 = vsyncadd (!%p750_p0), %s557_s28, 4294967168  ;;  %s26_s7 = sadd.s32 1, %s1115_s7   ;;  %s1602_s16 = sld [smem:[#allocation19_spill]] }
 0x38d   : > { %p23_p7 = scmp.ge.s32.totalorder %s26_s7, 14   ;;  %s1603_s10 = sld [smem:[#allocation20_spill]] }
 0x38e   : > { %s1604_s21 = smov %s1079_s22  ;;  %s1605_s22 = smov %s1083_s23 }
 0x38f   : > { %s1606_s23 = smov %s1380_s14  ;;  %s1607_s24 = smov %s1091_s25 }
 0x390   : > { %s1608_s25 = smov %s1095_s26  ;;  %s1609_s26 = smov %s1332_s4 }
 0x391   : > { %s1610_s27 = smov %s1107_s29  ;;  %s1611_s28 = smov %s1111_s30 }
 0x392   : > { %s1612_s29 = smov %s1602_s16  ;;  %25 = sbr.rel (!%p23_p7) target bundleno = 17 (0x11), region = 114 }
 0x393   : > { %s1613_s30 = smov %s1603_s10 }
 0x399   :  { %562 = vsyncpa [#allocation4], 1 }
 0x39a   :  { %564 = vsyncpa [#allocation4 + $0x1], 1 }
 0x39b   :  { %565 = vsyncpa [#allocation7], 1 }
 0x39c   :  { %567 = vsyncpa [#allocation7 + $0x1], 1 }
 0x39d   :  { %568 = vsyncpa [#allocation10], 1 }
 0x39e   :  { %569 = vsyncpa [#allocation5], 1 }
 0x39f   :  { %571 = vsyncpa [#allocation5 + $0x1], 1 }

</bundles_post_ra>
